<compile_context>
chip_gen: v7x
topology: tpu7x:2x2x1
jax: 0.10.0
libtpu: 0.0.40
codegen_flags: <defaults>
</compile_context>

<pallas_src>
import math

import jax
import jax.numpy as jnp
from jax import lax
from jax.experimental import pallas as pl
from jax.experimental.pallas import tpu as pltpu

PATH_NAMES = ("algebraic", "geometric", "statistical", "logical", "arithmetic")
NUM_PATHS = len(PATH_NAMES)
LANE = 128
SUBLANE = 8
P_PAD = 128            # router / confidence logits padded to one lane group
NEG_BIG = -1e30        # in-kernel softmax mask for padded score lanes


def _round_up(a, b):
    return ((a + b - 1) // b) * b


def _gelu_exact(v):
    # PyTorch nn.GELU() default = exact erf-based GELU.
    return 0.5 * v * (1.0 + lax.erf(v * (1.0 / math.sqrt(2.0))))


# --------------------------------------------------------------------------- #
# Hardware queries (best effort)
# --------------------------------------------------------------------------- #
def _tpu_info():
    try:
        return pltpu.get_tpu_info()
    except Exception:
        return None


def _vmem_limit_bytes():
    cap = getattr(_tpu_info(), "vmem_capacity_bytes", None)
    if not cap:
        cap = 64 * 1024 * 1024                     # conservative: v7x VMEM
    return int(min(100 * 1024 * 1024, int(cap * 0.8)))


def _num_tensorcores():
    info = _tpu_info()
    for attr in ("num_cores", "core_count", "num_tensorcores"):
        n = getattr(info, attr, None)
        if isinstance(n, int) and n > 0:
            return n
    try:
        return max(1, int(getattr(jax.devices()[0], "num_cores", 1)))
    except Exception:
        return 1


# Probe ONCE whether this JAX supports single-buffered weight BlockSpecs.
_BUFFERED_OK = []


def _weight_spec_kwargs():
    if not _BUFFERED_OK:
        try:
            spec = pl.BlockSpec((8, 128), lambda i: (0, 0),
                                pipeline_mode=pl.Buffered(1))

            def _probe(x_ref, o_ref):
                o_ref[...] = x_ref[...] + 1.0

            f = pl.pallas_call(
                _probe,
                out_shape=jax.ShapeDtypeStruct((8, 128), jnp.float32),
                grid=(1,),
                in_specs=[spec],
                out_specs=pl.BlockSpec((8, 128), lambda i: (0, 0)))
            jax.block_until_ready(f(jnp.zeros((8, 128), jnp.float32)))
            _BUFFERED_OK.append(True)
        except Exception:
            _BUFFERED_OK.append(False)
    return {"pipeline_mode": pl.Buffered(1)} if _BUFFERED_OK[0] else {}


# --------------------------------------------------------------------------- #
# Kernel
# --------------------------------------------------------------------------- #
def _make_kernel(*, hp, tile_m, n_rows, mask_rows, exact_gelu):
    def kernel(x_ref, w1_ref, b1_ref, w2r_ref, b2r_ref, w2c_ref, b2c_ref,
               wp_ref, bp_ref, out_ref, aux_ref):
        f32 = jnp.float32
        cdt = x_ref.dtype                          # compute dtype (bf16 default)
        x = x_ref[...]

        # Fused layer 1 -> GELU: [router | confidence | path0..path4] hiddens,
        # one lane-dense (tile_m, 12*Hp) bf16 MXU matmul.
        h = jnp.dot(x, w1_ref[...], preferred_element_type=f32) + b1_ref[...]
        h = _gelu_exact(h) if exact_gelu else jax.nn.gelu(h, approximate=True)

        # Router scores -> masked softmax over the 5 real lanes.
        s = jnp.dot(h[:, :hp].astype(cdt), w2r_ref[...],
                    preferred_element_type=f32) + b2r_ref[...]
        lane = lax.broadcasted_iota(jnp.int32, s.shape, 1)
        s = jnp.where(lane < NUM_PATHS, s, NEG_BIG)
        e = jnp.exp(s - jnp.max(s, axis=-1, keepdims=True))
        # approx reciprocal (EUP slot), ~1e-3 relative error: intentional.
        probs = e * pl.reciprocal(jnp.sum(e, axis=-1, keepdims=True),
                                  approx=True)

        # Confidence sigmoid.
        c = jnp.dot(h[:, hp:2 * hp].astype(cdt), w2c_ref[...],
                    preferred_element_type=f32) + b2c_ref[...]
        conf = pl.reciprocal(1.0 + jnp.exp(-c), approx=True)

        # Per-tile partial sums of probs / conf (wrapper only needs means).
        if mask_rows:
            rows = (lax.broadcasted_iota(jnp.int32, (tile_m, 1), 0)
                    + pl.program_id(0) * tile_m)
            valid = (rows < n_rows).astype(f32)
            pv, cv = probs * valid, conf * valid
        else:
            pv, cv = probs, conf
        g = tile_m // SUBLANE
        aux_ref[:, :P_PAD] = jnp.sum(pv.reshape(g, SUBLANE, P_PAD), axis=0)
        aux_ref[:, P_PAD:] = jnp.sum(cv.reshape(g, SUBLANE, P_PAD), axis=0)

        # Weighted path combine (no concat copy of h):
        #   acc = probs @ Bpath + sum_i probs[:, i] * (h_i @ W2_i)
        acc = jnp.dot(probs.astype(cdt), bp_ref[...],
                      preferred_element_type=f32)
        for i in range(NUM_PATHS):
            h_i = h[:, 2 * hp * (i + 1): 2 * hp * (i + 2)].astype(cdt)
            acc = acc + probs[:, i:i + 1] * jnp.dot(
                h_i, wp_ref[i], preferred_element_type=f32)
        out_ref[...] = acc.astype(out_ref.dtype)

    return kernel


# --------------------------------------------------------------------------- #
# Host-side parameter packing (once, outside the hot path)
# --------------------------------------------------------------------------- #
def pack_params(params, hidden_size, *, param_dtype=jnp.bfloat16):
    """Pad / fuse per-layer weights into lane-dense kernel operands.

    Weights are stored in `param_dtype` (bf16 default: native MXU rate, halved
    VMEM residency).  Biases added to f32 accumulators stay f32; the
    prob-weighted path-bias matrix participates in a matmul so it is cast.
    """
    (wr1, br1, wr2, br2, wc1, bc1, wc2, bc2, pw1, pb1, pw2, pb2) = params
    H, P = hidden_size, NUM_PATHS
    Hp = _round_up(H, LANE)

    def pad2(a, rows, cols):
        a = jnp.asarray(a, jnp.float32)
        return jnp.pad(a, ((0, rows - a.shape[0]), (0, cols - a.shape[1])))

    # Fused layer 1: (Hp, 12*Hp) = [router | confidence | 5 paths (2*Hp each)].
    w1 = jnp.concatenate(
        [pad2(wr1, Hp, Hp), pad2(wc1, Hp, Hp)]
        + [pad2(pw1[i], Hp, 2 * Hp) for i in range(P)], axis=1)
    b1 = jnp.concatenate(
        [pad2(br1, 1, Hp), pad2(bc1, 1, Hp)]
        + [pad2(pb1[i], 1, 2 * Hp) for i in range(P)], axis=1)

    # Router / confidence second layers, padded to 128 output lanes each.
    w2r, b2r = pad2(wr2, Hp, P_PAD), pad2(br2, 1, P_PAD)
    w2c, b2c = pad2(wc2, Hp, P_PAD), pad2(bc2, 1, P_PAD)

    # Stacked path second layers (P, 2*Hp, Hp) and prob-weighted bias matrix
    # (P_PAD, Hp):  sum_i p_i * b2_i  ==  probs @ Bpath.
    w_path = jnp.stack([pad2(pw2[i], 2 * Hp, Hp) for i in range(P)], axis=0)
    b_path = pad2(pb2[:, 0, :], P_PAD, Hp)

    cast = lambda a: a.astype(param_dtype)
    return dict(hidden_size=H, hidden_pad=Hp,
                w1=cast(w1), b1=b1, w2r=cast(w2r), b2r=b2r,
                w2c=cast(w2c), b2c=b2c,
                w_path=cast(w_path), b_path=cast(b_path))


_WEIGHT_NAMES = ("w1", "b1", "w2r", "b2r", "w2c", "b2c", "w_path", "b_path")


# --------------------------------------------------------------------------- #
# Wrapper
# --------------------------------------------------------------------------- #
def dynamic_reasoning_router(x, packed, *, tile_m=256, use_tanh_gelu=False):
    """x: (B, S, H).  Returns (combined_output, aux_dict) like the PyTorch module."""
    B, S, H = x.shape
    assert H == packed["hidden_size"]
    Hp = packed["hidden_pad"]
    P = NUM_PATHS
    cdt = packed["w1"].dtype                       # compute dtype (bf16 default)

    wk = _weight_spec_kwargs()                     # probed + cached once
    vmem_limit = _vmem_limit_bytes()

    # ---- tile_m selection --------------------------------------------------
    M = B * S
    m16 = _round_up(M, 16)
    tile_m = max(16, min(_round_up(tile_m, 16), m16))
    ncores = _num_tensorcores()
    if ncores > 1 and m16 >= ncores * 16:
        # Feed every TensorCore at least one row-tile (megacore sharding).
        tile_m = min(tile_m, _round_up((m16 + ncores - 1) // ncores, 16))

    weight_bytes = sum(int(packed[k].size) * packed[k].dtype.itemsize
                       for k in _WEIGHT_NAMES)
    weight_resident = weight_bytes * (1 if wk else 2)  # double-buffer fallback

    def _act_bytes(tm):
        # x tile (cdt, 2 bufs) + out tile (f32, 2 bufs) + h (f32) + misc f32.
        return (tm * Hp * jnp.dtype(cdt).itemsize * 2
                + tm * Hp * 4 * 2
                + tm * 12 * Hp * 4
                + tm * (Hp + 4 * P_PAD) * 4)

    while tile_m > 64 and weight_resident + _act_bytes(tile_m) > 0.85 * vmem_limit:
        tile_m = max(64, _round_up(tile_m // 2, 16))
    # TODO(synk): stream the 5 path weights over an extra "arbitrary" grid axis
    # if weight_resident alone exceeds the budget (very large Hp on v7x).

    M_pad = _round_up(M, tile_m)
    grid_m = M_pad // tile_m

    # ---- operands ------------------------------------------------------------
    x2 = x.reshape(M, H).astype(cdt)
    if M_pad != M or Hp != H:
        x2 = jnp.pad(x2, ((0, M_pad - M), (0, Hp - H)))

    def _const_spec(arr):
        zeros = (0,) * arr.ndim
        return pl.BlockSpec(arr.shape, lambda i, _z=zeros: _z, **wk)

    in_specs = [pl.BlockSpec((tile_m, Hp), lambda i: (i, 0))]
    in_specs += [_const_spec(packed[k]) for k in _WEIGHT_NAMES]
    out_specs = [
        pl.BlockSpec((tile_m, Hp), lambda i: (i, 0)),
        pl.BlockSpec((SUBLANE, 2 * P_PAD), lambda i: (i, 0)),
    ]
    out_shapes = (
        jax.ShapeDtypeStruct((M_pad, Hp), jnp.float32),
        jax.ShapeDtypeStruct((grid_m * SUBLANE, 2 * P_PAD), jnp.float32),
    )

    kernel = _make_kernel(hp=Hp, tile_m=tile_m, n_rows=M,
                          mask_rows=(M_pad != M),
                          exact_gelu=not use_tanh_gelu)

    out_full, aux_sums = pl.pallas_call(
        kernel,
        out_shape=out_shapes,
        grid_spec=pltpu.PrefetchScalarGridSpec(
            num_scalar_prefetch=0,
            grid=(grid_m,),
            in_specs=in_specs,
            out_specs=out_specs,
        ),
        compiler_params=pltpu.CompilerParams(
            dimension_semantics=("parallel",),
            vmem_limit_bytes=vmem_limit,
        ),
    )(x2, *(packed[k] for k in _WEIGHT_NAMES))

    combined = out_full
    if M_pad != M or Hp != H:
        combined = combined[:M, :H]
    combined = combined.reshape(B, S, H).astype(x.dtype)

    totals = jnp.sum(aux_sums, axis=0)
    inv_m = 1.0 / M
    probs_mean = totals[:P] * inv_m
    conf_mean = totals[P_PAD:P_PAD + P] * inv_m
    return combined, {
        "path_weights": {n: probs_mean[i] for i, n in enumerate(PATH_NAMES)},
        "path_confidences": {n: conf_mean[i] for i, n in enumerate(PATH_NAMES)},
    }


# --------------------------------------------------------------------------- #
# Init (matches PyTorch nn.Linear defaults) + pure-JAX reference
# --------------------------------------------------------------------------- #
def _init_linear(key, fan_in, fan_out):
    kw, kb = jax.random.split(key)
    bound = 1.0 / math.sqrt(fan_in)
    # Stored transposed to (fan_in, fan_out) so the kernel computes x @ W.
    w = jax.random.uniform(kw, (fan_in, fan_out), jnp.float32, -bound, bound)
    b = jax.random.uniform(kb, (1, fan_out), jnp.float32, -bound, bound)
    return w, b


def init_params(key, hidden_size):
    H, P = hidden_size, NUM_PATHS
    keys = jax.random.split(key, 4 + 2 * P)
    wr1, br1 = _init_linear(keys[0], H, H)
    wr2, br2 = _init_linear(keys[1], H, P)
    wc1, bc1 = _init_linear(keys[2], H, H)
    wc2, bc2 = _init_linear(keys[3], H, P)

    pw1, pb1, pw2, pb2 = [], [], [], []
    for i in range(P):
        w1, b1 = _init_linear(keys[4 + 2 * i], H, 2 * H)
        w2, b2 = _init_linear(keys[5 + 2 * i], 2 * H, H)
        pw1.append(w1)
        pb1.append(b1.reshape(1, 1, 2 * H))
        pw2.append(w2)
        pb2.append(b2.reshape(1, 1, H))
    pw1 = jnp.concatenate([w[None] for w in pw1], axis=0)   # (P, H, 2H)
    pb1 = jnp.concatenate(pb1, axis=0)                      # (P, 1, 2H)
    pw2 = jnp.concatenate([w[None] for w in pw2], axis=0)   # (P, 2H, H)
    pb2 = jnp.concatenate(pb2, axis=0)                      # (P, 1, H)

    return (wr1, br1, wr2, br2, wc1, bc1, wc2, bc2, pw1, pb1, pw2, pb2)


def _reference(x, params):
    (wr1, br1, wr2, br2, wc1, bc1, wc2, bc2, pw1, pb1, pw2, pb2) = params
    g = _gelu_exact
    scores = g(x @ wr1 + br1) @ wr2 + br2
    probs = jax.nn.softmax(scores, axis=-1)
    conf = jax.nn.sigmoid(g(x @ wc1 + bc1) @ wc2 + bc2)
    combined = jnp.zeros_like(x)
    for i in range(NUM_PATHS):
        o = g(x @ pw1[i] + pb1[i]) @ pw2[i] + pb2[i]
        combined = combined + probs[..., i:i + 1] * o
    return combined, probs, conf


if __name__ == "__main__":
    B, S, H = 2, 8, 32  # batch=2, seq=8, hidden=32
    key = jax.random.PRNGKey(0)
    kx, kp = jax.random.split(key)
    x = jax.random.normal(kx, (B, S, H), dtype=jnp.float32)
    params = init_params(kp, H)

    packed = pack_params(params, H)          # bf16 weights by default
    combined, aux = dynamic_reasoning_router(x, packed, tile_m=256)
    jax.block_until_ready(combined)
    for v in aux["path_weights"].values():
        jax.block_until_ready(v)
    for v in aux["path_confidences"].values():
        jax.block_until_ready(v)

    # Self-check against a pure-JAX (f32, exact-GELU) reference.
    ref_combined, ref_probs, ref_conf = _reference(x, params)
    assert jnp.allclose(combined, ref_combined, atol=3e-2, rtol=3e-2), \
        "combined output mismatch"
    ref_pw = jnp.mean(ref_probs, axis=(0, 1))
    ref_pc = jnp.mean(ref_conf, axis=(0, 1))
    for i, n in enumerate(PATH_NAMES):
        assert jnp.allclose(aux["path_weights"][n], ref_pw[i], atol=1e-2)
        assert jnp.allclose(aux["path_confidences"][n], ref_pc[i], atol=1e-2)

    print("KERNEL_OK")
</pallas_src>

<mosaic_0001>
module attributes {stable_mosaic.version = 11 : i64} {
  func.func @_probe(%arg0: i32, %arg1: memref<8x128xf32, #tpu.memory_space<vmem>>, %arg2: memref<8x128xf32, #tpu.memory_space<vmem>>) attributes {dimension_semantics = [#tpu.dimension_semantics<arbitrary>], iteration_bounds = array<i64: 1>, scalar_prefetch = 0 : i64, scratch_operands = 0 : i64, tpu.core_type = #tpu.core_type<tc>, window_params = [{pipeline_mode = #tpu.pipeline_mode<synchronous>, transform_indices = @transform_0, window_bounds = array<i64: 8, 128>}, {pipeline_mode = #tpu.pipeline_mode<synchronous>, transform_indices = @transform_1, window_bounds = array<i64: 8, 128>}]} {
    %c0 = arith.constant 0 : index
    %c0_0 = arith.constant 0 : index
    %0 = vector.load %arg1[%c0, %c0_0] : memref<8x128xf32, #tpu.memory_space<vmem>>, vector<8x128xf32>
    %cst = arith.constant 1.000000e+00 : f32
    %1 = vector.broadcast %cst : f32 to vector<8x128xf32>
    %2 = arith.addf %0, %1 : vector<8x128xf32>
    %c0_1 = arith.constant 0 : index
    %c0_2 = arith.constant 0 : index
    %3 = vector.load %arg2[%c0_1, %c0_2] : memref<8x128xf32, #tpu.memory_space<vmem>>, vector<8x128xf32>
    tpu.vector_store %arg2[%c0_1, %c0_2], %2 {strides = array<i32>} : memref<8x128xf32, #tpu.memory_space<vmem>>, vector<8x128xf32>,
    return
  }
  func.func @transform_0(%arg0: i32) -> (i32, i32) {
    %c0_i32 = arith.constant 0 : i32
    %c0_i32_0 = arith.constant 0 : i32
    %c0_i32_1 = arith.constant 0 : i32
    return %c0_i32, %c0_i32_0 : i32, i32
  }
  func.func @transform_1(%arg0: i32) -> (i32, i32) {
    %c0_i32 = arith.constant 0 : i32
    %c0_i32_0 = arith.constant 0 : i32
    %c0_i32_1 = arith.constant 0 : i32
    return %c0_i32, %c0_i32_0 : i32, i32
  }
}

module attributes {stable_mosaic.version = 11 : i64} {
  func.func @kernel(%arg0: i32, %arg1: memref<16x128xbf16, #tpu.memory_space<vmem>>, %arg2: memref<128x1536xbf16, #tpu.memory_space<vmem>>, %arg3: memref<1x1536xf32, #tpu.memory_space<vmem>>, %arg4: memref<128x128xbf16, #tpu.memory_space<vmem>>, %arg5: memref<1x128xf32, #tpu.memory_space<vmem>>, %arg6: memref<128x128xbf16, #tpu.memory_space<vmem>>, %arg7: memref<1x128xf32, #tpu.memory_space<vmem>>, %arg8: memref<5x256x128xbf16, #tpu.memory_space<vmem>>, %arg9: memref<128x128xbf16, #tpu.memory_space<vmem>>, %arg10: memref<16x128xf32, #tpu.memory_space<vmem>>, %arg11: memref<8x256xf32, #tpu.memory_space<vmem>>) attributes {dimension_semantics = [#tpu.dimension_semantics<parallel>], iteration_bounds = array<i64: 1>, scalar_prefetch = 0 : i64, scratch_operands = 0 : i64, tpu.core_type = #tpu.core_type<tc>, window_params = [{transform_indices = @transform_0, window_bounds = array<i64: 16, 128>}, {pipeline_mode = #tpu.pipeline_mode<synchronous>, transform_indices = @transform_1, window_bounds = array<i64: 128, 1536>}, {pipeline_mode = #tpu.pipeline_mode<synchronous>, transform_indices = @transform_2, window_bounds = array<i64: 1, 1536>}, {pipeline_mode = #tpu.pipeline_mode<synchronous>, transform_indices = @transform_3, window_bounds = array<i64: 128, 128>}, {pipeline_mode = #tpu.pipeline_mode<synchronous>, transform_indices = @transform_4, window_bounds = array<i64: 1, 128>}, {pipeline_mode = #tpu.pipeline_mode<synchronous>, transform_indices = @transform_5, window_bounds = array<i64: 128, 128>}, {pipeline_mode = #tpu.pipeline_mode<synchronous>, transform_indices = @transform_6, window_bounds = array<i64: 1, 128>}, {pipeline_mode = #tpu.pipeline_mode<synchronous>, transform_indices = @transform_7, window_bounds = array<i64: 5, 256, 128>}, {pipeline_mode = #tpu.pipeline_mode<synchronous>, transform_indices = @transform_8, window_bounds = array<i64: 128, 128>}, {transform_indices = @transform_9, window_bounds = array<i64: 16, 128>}, {transform_indices = @transform_10, window_bounds = array<i64: 8, 256>}]} {
    %c0 = arith.constant 0 : index
    %c0_0 = arith.constant 0 : index
    %0 = vector.load %arg1[%c0, %c0_0] : memref<16x128xbf16, #tpu.memory_space<vmem>>, vector<16x128xbf16>
    %c0_1 = arith.constant 0 : index
    %c0_2 = arith.constant 0 : index
    %1 = vector.load %arg2[%c0_1, %c0_2] : memref<128x1536xbf16, #tpu.memory_space<vmem>>, vector<128x1536xbf16>
    %cst = arith.constant dense<0.000000e+00> : vector<16x1536xf32>
    %2 = tpu.matmul %0, %1, %cst {dimension_numbers = #tpu.dot_dimension_numbers<[1], [0], [0], [1], [0, 0, 1, 1], [], []>} : vector<16x128xbf16>, vector<128x1536xbf16>, vector<16x1536xf32> -> vector<16x1536xf32>
    %c0_3 = arith.constant 0 : index
    %c0_4 = arith.constant 0 : index
    %3 = vector.load %arg3[%c0_3, %c0_4] : memref<1x1536xf32, #tpu.memory_space<vmem>>, vector<1x1536xf32>
    %4 = vector.broadcast %3 : vector<1x1536xf32> to vector<16x1536xf32>
    %5 = arith.addf %2, %4 : vector<16x1536xf32>
    %cst_5 = arith.constant 5.000000e-01 : f32
    %6 = vector.broadcast %cst_5 : f32 to vector<16x1536xf32>
    %7 = arith.mulf %6, %5 : vector<16x1536xf32>
    %cst_6 = arith.constant 0.707106769 : f32
    %8 = vector.broadcast %cst_6 : f32 to vector<16x1536xf32>
    %9 = arith.mulf %5, %8 : vector<16x1536xf32>
    %10 = math.erf %9 : vector<16x1536xf32>
    %cst_7 = arith.constant 1.000000e+00 : f32
    %11 = vector.broadcast %cst_7 : f32 to vector<16x1536xf32>
    %12 = arith.addf %11, %10 : vector<16x1536xf32>
    %13 = arith.mulf %7, %12 : vector<16x1536xf32>
    %14 = vector.extract_strided_slice %13 {offsets = [0, 0], sizes = [16, 128], strides = [1, 1]} : vector<16x1536xf32> to vector<16x128xf32>
    %15 = arith.truncf %14 : vector<16x128xf32> to vector<16x128xbf16>
    %c0_8 = arith.constant 0 : index
    %c0_9 = arith.constant 0 : index
    %16 = vector.load %arg4[%c0_8, %c0_9] : memref<128x128xbf16, #tpu.memory_space<vmem>>, vector<128x128xbf16>
    %cst_10 = arith.constant dense<0.000000e+00> : vector<16x128xf32>
    %17 = tpu.matmul %15, %16, %cst_10 {dimension_numbers = #tpu.dot_dimension_numbers<[1], [0], [0], [1], [0, 0, 1, 1], [], []>} : vector<16x128xbf16>, vector<128x128xbf16>, vector<16x128xf32> -> vector<16x128xf32>
    %c0_11 = arith.constant 0 : index
    %c0_12 = arith.constant 0 : index
    %18 = vector.load %arg5[%c0_11, %c0_12] : memref<1x128xf32, #tpu.memory_space<vmem>>, vector<1x128xf32>
    %19 = vector.broadcast %18 : vector<1x128xf32> to vector<16x128xf32>
    %20 = arith.addf %17, %19 : vector<16x128xf32>
    %21 = tpu.iota {dimensions = array<i32: 1>} : vector<16x128xi32>
    %c5_i32 = arith.constant 5 : i32
    %22 = vector.broadcast %c5_i32 : i32 to vector<16x128xi32>
    %23 = arith.cmpi slt, %21, %22 : vector<16x128xi32>
    %cst_13 = arith.constant -1.000000e+30 : f32
    %24 = vector.broadcast %cst_13 : f32 to vector<16x128xf32>
    %25 = arith.select %23, %20, %24 : vector<16x128xi1>, vector<16x128xf32>
    %cst_14 = arith.constant dense<0xFF800000> : vector<16xf32>
    %26 = vector.multi_reduction <maximumf>, %25, %cst_14 [1] : vector<16x128xf32> to vector<16xf32>
    %27 = vector.shape_cast %26 : vector<16xf32> to vector<16x1xf32>
    %28 = vector.broadcast %27 : vector<16x1xf32> to vector<16x128xf32>
    %29 = arith.subf %25, %28 : vector<16x128xf32>
    %30 = math.exp %29 : vector<16x128xf32>
    %cst_15 = arith.constant dense<0.000000e+00> : vector<16xf32>
    %31 = vector.multi_reduction <add>, %30, %cst_15 [1] : vector<16x128xf32> to vector<16xf32>
    %32 = vector.shape_cast %31 : vector<16xf32> to vector<16x1xf32>
    %33 = tpu.reciprocal %32 {approx = true} : vector<16x1xf32> -> vector<16x1xf32>
    %34 = vector.broadcast %33 : vector<16x1xf32> to vector<16x128xf32>
    %35 = arith.mulf %30, %34 : vector<16x128xf32>
    %36 = vector.extract_strided_slice %13 {offsets = [0, 128], sizes = [16, 128], strides = [1, 1]} : vector<16x1536xf32> to vector<16x128xf32>
    %37 = arith.truncf %36 : vector<16x128xf32> to vector<16x128xbf16>
    %c0_16 = arith.constant 0 : index
    %c0_17 = arith.constant 0 : index
    %38 = vector.load %arg6[%c0_16, %c0_17] : memref<128x128xbf16, #tpu.memory_space<vmem>>, vector<128x128xbf16>
    %cst_18 = arith.constant dense<0.000000e+00> : vector<16x128xf32>
    %39 = tpu.matmul %37, %38, %cst_18 {dimension_numbers = #tpu.dot_dimension_numbers<[1], [0], [0], [1], [0, 0, 1, 1], [], []>} : vector<16x128xbf16>, vector<128x128xbf16>, vector<16x128xf32> -> vector<16x128xf32>
    %c0_19 = arith.constant 0 : index
    %c0_20 = arith.constant 0 : index
    %40 = vector.load %arg7[%c0_19, %c0_20] : memref<1x128xf32, #tpu.memory_space<vmem>>, vector<1x128xf32>
    %41 = vector.broadcast %40 : vector<1x128xf32> to vector<16x128xf32>
    %42 = arith.addf %39, %41 : vector<16x128xf32>
    %cst_21 = arith.constant 0.000000e+00 : f32
    %43 = vector.broadcast %cst_21 : f32 to vector<16x128xf32>
    %44 = arith.subf %43, %42 : vector<16x128xf32>
    %45 = math.exp %44 : vector<16x128xf32>
    %cst_22 = arith.constant 1.000000e+00 : f32
    %46 = vector.broadcast %cst_22 : f32 to vector<16x128xf32>
    %47 = arith.addf %46, %45 : vector<16x128xf32>
    %48 = tpu.reciprocal %47 {approx = true} : vector<16x128xf32> -> vector<16x128xf32>
    %49 = vector.shape_cast %35 : vector<16x128xf32> to vector<2x8x128xf32>
    %cst_23 = arith.constant dense<0.000000e+00> : vector<8x128xf32>
    %50 = vector.multi_reduction <add>, %49, %cst_23 [0] : vector<2x8x128xf32> to vector<8x128xf32>
    %c0_24 = arith.constant 0 : index
    %c0_25 = arith.constant 0 : index
    %51 = vector.load %arg11[%c0_24, %c0_25] : memref<8x256xf32, #tpu.memory_space<vmem>>, vector<8x128xf32>
    tpu.vector_store %arg11[%c0_24, %c0_25], %50 {strides = array<i32>} : memref<8x256xf32, #tpu.memory_space<vmem>>, vector<8x128xf32>,
    %52 = vector.shape_cast %48 : vector<16x128xf32> to vector<2x8x128xf32>
    %cst_26 = arith.constant dense<0.000000e+00> : vector<8x128xf32>
    %53 = vector.multi_reduction <add>, %52, %cst_26 [0] : vector<2x8x128xf32> to vector<8x128xf32>
    %c0_27 = arith.constant 0 : index
    %c128 = arith.constant 128 : index
    %54 = vector.load %arg11[%c0_27, %c128] : memref<8x256xf32, #tpu.memory_space<vmem>>, vector<8x128xf32>
    tpu.vector_store %arg11[%c0_27, %c128], %53 {strides = array<i32>} : memref<8x256xf32, #tpu.memory_space<vmem>>, vector<8x128xf32>,
    %55 = arith.truncf %35 : vector<16x128xf32> to vector<16x128xbf16>
    %c0_28 = arith.constant 0 : index
    %c0_29 = arith.constant 0 : index
    %56 = vector.load %arg9[%c0_28, %c0_29] : memref<128x128xbf16, #tpu.memory_space<vmem>>, vector<128x128xbf16>
    %cst_30 = arith.constant dense<0.000000e+00> : vector<16x128xf32>
    %57 = tpu.matmul %55, %56, %cst_30 {dimension_numbers = #tpu.dot_dimension_numbers<[1], [0], [0], [1], [0, 0, 1, 1], [], []>} : vector<16x128xbf16>, vector<128x128xbf16>, vector<16x128xf32> -> vector<16x128xf32>
    %58 = vector.extract_strided_slice %13 {offsets = [0, 256], sizes = [16, 256], strides = [1, 1]} : vector<16x1536xf32> to vector<16x256xf32>
    %59 = arith.truncf %58 : vector<16x256xf32> to vector<16x256xbf16>
    %60 = vector.extract_strided_slice %35 {offsets = [0, 0], sizes = [16, 1], strides = [1, 1]} : vector<16x128xf32> to vector<16x1xf32>
    %c0_31 = arith.constant 0 : index
    %c0_32 = arith.constant 0 : index
    %c0_33 = arith.constant 0 : index
    %61 = vector.load %arg8[%c0_31, %c0_32, %c0_33] : memref<5x256x128xbf16, #tpu.memory_space<vmem>>, vector<1x256x128xbf16>
    %62 = vector.shape_cast %61 : vector<1x256x128xbf16> to vector<256x128xbf16>
    %cst_34 = arith.constant dense<0.000000e+00> : vector<16x128xf32>
    %63 = tpu.matmul %59, %62, %cst_34 {dimension_numbers = #tpu.dot_dimension_numbers<[1], [0], [0], [1], [0, 0, 1, 1], [], []>} : vector<16x256xbf16>, vector<256x128xbf16>, vector<16x128xf32> -> vector<16x128xf32>
    %64 = vector.broadcast %60 : vector<16x1xf32> to vector<16x128xf32>
    %65 = arith.mulf %64, %63 : vector<16x128xf32>
    %66 = arith.addf %57, %65 : vector<16x128xf32>
    %67 = vector.extract_strided_slice %13 {offsets = [0, 512], sizes = [16, 256], strides = [1, 1]} : vector<16x1536xf32> to vector<16x256xf32>
    %68 = arith.truncf %67 : vector<16x256xf32> to vector<16x256xbf16>
    %69 = vector.extract_strided_slice %35 {offsets = [0, 1], sizes = [16, 1], strides = [1, 1]} : vector<16x128xf32> to vector<16x1xf32>
    %c1 = arith.constant 1 : index
    %c0_35 = arith.constant 0 : index
    %c0_36 = arith.constant 0 : index
    %70 = vector.load %arg8[%c1, %c0_35, %c0_36] : memref<5x256x128xbf16, #tpu.memory_space<vmem>>, vector<1x256x128xbf16>
    %71 = vector.shape_cast %70 : vector<1x256x128xbf16> to vector<256x128xbf16>
    %cst_37 = arith.constant dense<0.000000e+00> : vector<16x128xf32>
    %72 = tpu.matmul %68, %71, %cst_37 {dimension_numbers = #tpu.dot_dimension_numbers<[1], [0], [0], [1], [0, 0, 1, 1], [], []>} : vector<16x256xbf16>, vector<256x128xbf16>, vector<16x128xf32> -> vector<16x128xf32>
    %73 = vector.broadcast %69 : vector<16x1xf32> to vector<16x128xf32>
    %74 = arith.mulf %73, %72 : vector<16x128xf32>
    %75 = arith.addf %66, %74 : vector<16x128xf32>
    %76 = vector.extract_strided_slice %13 {offsets = [0, 768], sizes = [16, 256], strides = [1, 1]} : vector<16x1536xf32> to vector<16x256xf32>
    %77 = arith.truncf %76 : vector<16x256xf32> to vector<16x256xbf16>
    %78 = vector.extract_strided_slice %35 {offsets = [0, 2], sizes = [16, 1], strides = [1, 1]} : vector<16x128xf32> to vector<16x1xf32>
    %c2 = arith.constant 2 : index
    %c0_38 = arith.constant 0 : index
    %c0_39 = arith.constant 0 : index
    %79 = vector.load %arg8[%c2, %c0_38, %c0_39] : memref<5x256x128xbf16, #tpu.memory_space<vmem>>, vector<1x256x128xbf16>
    %80 = vector.shape_cast %79 : vector<1x256x128xbf16> to vector<256x128xbf16>
    %cst_40 = arith.constant dense<0.000000e+00> : vector<16x128xf32>
    %81 = tpu.matmul %77, %80, %cst_40 {dimension_numbers = #tpu.dot_dimension_numbers<[1], [0], [0], [1], [0, 0, 1, 1], [], []>} : vector<16x256xbf16>, vector<256x128xbf16>, vector<16x128xf32> -> vector<16x128xf32>
    %82 = vector.broadcast %78 : vector<16x1xf32> to vector<16x128xf32>
    %83 = arith.mulf %82, %81 : vector<16x128xf32>
    %84 = arith.addf %75, %83 : vector<16x128xf32>
    %85 = vector.extract_strided_slice %13 {offsets = [0, 1024], sizes = [16, 256], strides = [1, 1]} : vector<16x1536xf32> to vector<16x256xf32>
    %86 = arith.truncf %85 : vector<16x256xf32> to vector<16x256xbf16>
    %87 = vector.extract_strided_slice %35 {offsets = [0, 3], sizes = [16, 1], strides = [1, 1]} : vector<16x128xf32> to vector<16x1xf32>
    %c3 = arith.constant 3 : index
    %c0_41 = arith.constant 0 : index
    %c0_42 = arith.constant 0 : index
    %88 = vector.load %arg8[%c3, %c0_41, %c0_42] : memref<5x256x128xbf16, #tpu.memory_space<vmem>>, vector<1x256x128xbf16>
    %89 = vector.shape_cast %88 : vector<1x256x128xbf16> to vector<256x128xbf16>
    %cst_43 = arith.constant dense<0.000000e+00> : vector<16x128xf32>
    %90 = tpu.matmul %86, %89, %cst_43 {dimension_numbers = #tpu.dot_dimension_numbers<[1], [0], [0], [1], [0, 0, 1, 1], [], []>} : vector<16x256xbf16>, vector<256x128xbf16>, vector<16x128xf32> -> vector<16x128xf32>
    %91 = vector.broadcast %87 : vector<16x1xf32> to vector<16x128xf32>
    %92 = arith.mulf %91, %90 : vector<16x128xf32>
    %93 = arith.addf %84, %92 : vector<16x128xf32>
    %94 = vector.extract_strided_slice %13 {offsets = [0, 1280], sizes = [16, 256], strides = [1, 1]} : vector<16x1536xf32> to vector<16x256xf32>
    %95 = arith.truncf %94 : vector<16x256xf32> to vector<16x256xbf16>
    %96 = vector.extract_strided_slice %35 {offsets = [0, 4], sizes = [16, 1], strides = [1, 1]} : vector<16x128xf32> to vector<16x1xf32>
    %c4 = arith.constant 4 : index
    %c0_44 = arith.constant 0 : index
    %c0_45 = arith.constant 0 : index
    %97 = vector.load %arg8[%c4, %c0_44, %c0_45] : memref<5x256x128xbf16, #tpu.memory_space<vmem>>, vector<1x256x128xbf16>
    %98 = vector.shape_cast %97 : vector<1x256x128xbf16> to vector<256x128xbf16>
    %cst_46 = arith.constant dense<0.000000e+00> : vector<16x128xf32>
    %99 = tpu.matmul %95, %98, %cst_46 {dimension_numbers = #tpu.dot_dimension_numbers<[1], [0], [0], [1], [0, 0, 1, 1], [], []>} : vector<16x256xbf16>, vector<256x128xbf16>, vector<16x128xf32> -> vector<16x128xf32>
    %100 = vector.broadcast %96 : vector<16x1xf32> to vector<16x128xf32>
    %101 = arith.mulf %100, %99 : vector<16x128xf32>
    %102 = arith.addf %93, %101 : vector<16x128xf32>
    %c0_47 = arith.constant 0 : index
    %c0_48 = arith.constant 0 : index
    %103 = vector.load %arg10[%c0_47, %c0_48] : memref<16x128xf32, #tpu.memory_space<vmem>>, vector<16x128xf32>
    tpu.vector_store %arg10[%c0_47, %c0_48], %102 {strides = array<i32>} : memref<16x128xf32, #tpu.memory_space<vmem>>, vector<16x128xf32>,
    return
  }
  func.func @transform_0(%arg0: i32) -> (i32, i32) {
    %c0_i32 = arith.constant 0 : i32
    %c0_i32_0 = arith.constant 0 : i32
    return %arg0, %c0_i32 : i32, i32
  }
  func.func @transform_1(%arg0: i32) -> (i32, i32) {
    %c0_i32 = arith.constant 0 : i32
    %c0_i32_0 = arith.constant 0 : i32
    %c0_i32_1 = arith.constant 0 : i32
    return %c0_i32, %c0_i32_0 : i32, i32
  }
  func.func @transform_2(%arg0: i32) -> (i32, i32) {
    %c0_i32 = arith.constant 0 : i32
    %c0_i32_0 = arith.constant 0 : i32
    %c0_i32_1 = arith.constant 0 : i32
    return %c0_i32, %c0_i32_0 : i32, i32
  }
  func.func @transform_3(%arg0: i32) -> (i32, i32) {
    %c0_i32 = arith.constant 0 : i32
    %c0_i32_0 = arith.constant 0 : i32
    %c0_i32_1 = arith.constant 0 : i32
    return %c0_i32, %c0_i32_0 : i32, i32
  }
  func.func @transform_4(%arg0: i32) -> (i32, i32) {
    %c0_i32 = arith.constant 0 : i32
    %c0_i32_0 = arith.constant 0 : i32
    %c0_i32_1 = arith.constant 0 : i32
    return %c0_i32, %c0_i32_0 : i32, i32
  }
  func.func @transform_5(%arg0: i32) -> (i32, i32) {
    %c0_i32 = arith.constant 0 : i32
    %c0_i32_0 = arith.constant 0 : i32
    %c0_i32_1 = arith.constant 0 : i32
    return %c0_i32, %c0_i32_0 : i32, i32
  }
  func.func @transform_6(%arg0: i32) -> (i32, i32) {
    %c0_i32 = arith.constant 0 : i32
    %c0_i32_0 = arith.constant 0 : i32
    %c0_i32_1 = arith.constant 0 : i32
    return %c0_i32, %c0_i32_0 : i32, i32
  }
  func.func @transform_7(%arg0: i32) -> (i32, i32, i32) {
    %c0_i32 = arith.constant 0 : i32
    %c0_i32_0 = arith.constant 0 : i32
    %c0_i32_1 = arith.constant 0 : i32
    %c0_i32_2 = arith.constant 0 : i32
    return %c0_i32, %c0_i32_0, %c0_i32_1 : i32, i32, i32
  }
  func.func @transform_8(%arg0: i32) -> (i32, i32) {
    %c0_i32 = arith.constant 0 : i32
    %c0_i32_0 = arith.constant 0 : i32
    %c0_i32_1 = arith.constant 0 : i32
    return %c0_i32, %c0_i32_0 : i32, i32
  }
  func.func @transform_9(%arg0: i32) -> (i32, i32) {
    %c0_i32 = arith.constant 0 : i32
    %c0_i32_0 = arith.constant 0 : i32
    return %arg0, %c0_i32 : i32, i32
  }
  func.func @transform_10(%arg0: i32) -> (i32, i32) {
    %c0_i32 = arith.constant 0 : i32
    %c0_i32_0 = arith.constant 0 : i32
    return %arg0, %c0_i32 : i32, i32
  }
}

</mosaic_0001>

<bundles_post_ra>
// kernel: tpu_custom_call.1
= control target key start
LH: loop header
LB: loop body
LE: loop exit
PB: predicated region body
PF: predicated region fallthrough
CT: control target
= control target key end

     0   :  { %6 = vsyncpa [#allocation3], 0  ;;  %s125_s0 = inlined_call_operand.hbm [shape: f32[8,128], index: 0, kind: input, shape index: {}]   ;;  %s126_s1 = inlined_call_operand.hbm [shape: f32[8,128], index: 1, kind: output, shape index: {}]  }
   0x1   :  { %7 = vsyncpa [#allocation4], 0  ;;  %s89_s6 = smov [#allocation2]   ;;  %s41_s10 = scalar_lea.hbm %s125_s0, 128 }
   0x2   :  { %s14_s7 = sshll.u32 %s89_s6, 4  ;;  %p42_p0 = scmp.ne.s32.totalorder %s125_s0, %s41_s10  ;;  %s15_s7 = int_to_ptr.vmem [resolvable:$true] %s14_s7 }
   0x3   :  { %p45_p1 = scmp.lt.u32.totalorder %s41_s10, %s125_s0 }
   0x5   :  { %p47_p2 = pnand %p45_p1, %p42_p0 }
   0x7   :  { %50 = shalt.err (!%p47_p2)
}
   0x8   :  { %s51_s15 = scalar_lea.vmem %s15_s7, 128  ;;  %p56_p4 = scmp.lt.s32.totalorder %s15_s7, %s15_s7 }
   0x9   :  { %p52_p3 = scmp.ne.s32.totalorder %s15_s7, %s51_s15  ;;  %p57_p5 = scmp.lt.s32.totalorder %s51_s15, %s51_s15 }
   0xb   :  { %p58_p6 = por %p57_p5, %p56_p4 }
   0xd   :  { %p59_p7 = pnand %p58_p6, %p52_p3 }
   0xf   :  { %62 = shalt.err (!%p59_p7)
}
  0x10   :  { %17 = dma.hbm_to_vmem [thread:$0]  %s125_s0, 128, %s15_s7, [#allocation3]  }
  0x11   :  { %85 = dma.done.wait [#allocation3], 128  }
  0x12   :  { %86 = vsyncadd [#allocation3], 4294967168  ;;  %s90_s18 = smov [#allocation5]   ;;  %v21_v0 = vld [vmem:[#allocation2] sm:$0xff] }
  0x13   :  { %s30_s19 = sshll.u32 %s90_s18, 4  ;;  %v22_v1 = vadd.f32 1.0, %v21_v0  ;;  %s31_s19 = int_to_ptr.vmem [resolvable:$true] %s30_s19 }
  0x14   :  { %s63_s20 = scalar_lea.vmem %s31_s19, 128  ;;  %p68_p9 = scmp.lt.s32.totalorder %s31_s19, %s31_s19 }
  0x15   :  { %23 = vst [vmem:[#allocation5] sm:$0xff] %v22_v1  ;;  %p64_p8 = scmp.ne.s32.totalorder %s31_s19, %s63_s20  ;;  %p69_p10 = scmp.lt.s32.totalorder %s63_s20, %s63_s20 }
  0x17   :  { %p70_p11 = por %p69_p10, %p68_p9 }
  0x19   :  { %p71_p12 = pnand %p70_p11, %p64_p8 }
  0x1b   :  { %74 = shalt.err (!%p71_p12)
}
  0x1c   :  { %s75_s23 = scalar_lea.hbm %s126_s1, 128 }
  0x1d   :  { %p76_p13 = scmp.ne.s32.totalorder %s126_s1, %s75_s23  ;;  %p79_p0 = scmp.lt.u32.totalorder %s75_s23, %s126_s1 }
  0x1f   :  { %p81_p1 = pnand %p79_p0, %p76_p13 }
  0x21   :  { %84 = shalt.err (!%p81_p1)
}
  0x22   :  { %33 = dma.vmem_to_hbm [thread:$0]  %s31_s19, 128, %s126_s1, [#allocation4]  }
  0x23   :  { %87 = dma.done.wait [#allocation4], 128  }
  0x24   :  { %88 = vsyncadd [#allocation4], 4294967168 }
  0x25   :  { %37 = vsyncpa [#allocation3], 1 }
  0x26   :  { %38 = vsyncpa [#allocation4], 1 }

// kernel: tpu_custom_call.1
= control target key start
LH: loop header
LB: loop body
LE: loop exit
PB: predicated region body
PF: predicated region fallthrough
CT: control target
= control target key end

     0   :  { %16 = vsyncpa [#allocation3], 0  ;;  %s3806_s0 = inlined_call_operand.hbm [shape: bf16[16,128], index: 0, kind: input, shape index: {}]   ;;  %s3807_s1 = inlined_call_operand.hbm [shape: bf16[128,1536], index: 1, kind: input, shape index: {}]   ;;  %s3808_s2 = inlined_call_operand.hbm [shape: f32[1,1536], index: 2, kind: input, shape index: {}]   ;;  %s3809_s3 = inlined_call_operand.hbm [shape: bf16[128,128], index: 3, kind: input, shape index: {}]   ;;  %s3810_s4 = inlined_call_operand.vmem [shape: f32[1,128], index: 4, kind: input, shape index: {}]   ;;  %s3811_s5 = inlined_call_operand.hbm [shape: bf16[128,128], index: 5, kind: input, shape index: {}]   ;;  %s3812_s6 = inlined_call_operand.vmem [shape: f32[1,128], index: 6, kind: input, shape index: {}]   ;;  %s3813_s7 = inlined_call_operand.hbm [shape: bf16[5,256,128], index: 7, kind: input, shape index: {}]   ;;  %s3814_s8 = inlined_call_operand.hbm [shape: bf16[128,128], index: 8, kind: input, shape index: {}]   ;;  %s3815_s9 = inlined_call_operand.hbm [shape: f32[16,128], index: 9, kind: output, shape index: {0}]   ;;  %s3816_s10 = inlined_call_operand.hbm [shape: f32[8,256], index: 10, kind: output, shape index: {1}]  }
   0x1   :  { %17 = vsyncpa [#allocation6], 0 }
   0x2   :  { %18 = vsyncpa [#allocation9], 0 }
   0x3   :  { %19 = vsyncpa [#allocation12], 0 }
   0x4   :  { %20 = vsyncpa [#allocation4], 0 }
   0x5   :  { %21 = vsyncpa [#allocation16], 0  ;;  %s3435_s13 = smov [#allocation5]   ;;  %s3225_s17 = scalar_lea.hbm %s3807_s1, 12288 }
   0x6   :  { %s39_s14 = sshll.u32 %s3435_s13, 4  ;;  %p3226_p0 = scmp.ne.s32.totalorder %s3807_s1, %s3225_s17  ;;  %s40_s14 = int_to_ptr.vmem [resolvable:$true] %s39_s14 }
   0x7   :  { %p3229_p1 = scmp.lt.u32.totalorder %s3225_s17, %s3807_s1 }
   0x9   :  { %p3231_p2 = pnand %p3229_p1, %p3226_p0 }
   0xb   :  { %3234 = shalt.err (!%p3231_p2)
}
   0xc   :  { %s3235_s22 = scalar_lea.vmem %s40_s14, 12288  ;;  %p3240_p4 = scmp.lt.s32.totalorder %s40_s14, %s40_s14 }
   0xd   :  { %p3236_p3 = scmp.ne.s32.totalorder %s40_s14, %s3235_s22  ;;  %p3241_p5 = scmp.lt.s32.totalorder %s3235_s22, %s3235_s22 }
   0xf   :  { %p3242_p6 = por %p3241_p5, %p3240_p4 }
  0x11   :  { %p3243_p7 = pnand %p3242_p6, %p3236_p3 }
  0x13   :  { %3246 = shalt.err (!%p3243_p7)
}
  0x14   :  { %s3436_s23 = smov 768   ;;  %s3437_s24 = smov 48  }
  0x15   :  { %45 = dma.hbm_to_vmem [thread:$0]  %s3807_s1, 12288, %s40_s14, [#allocation6], %s3436_s23, %s3436_s23, %s3437_s24  }
  0x16   :  { %s3438_s27 = smov [#allocation8]   ;;  %s3439_s29 = smov [#allocation11]  }
  0x17   :  { %s61_s28 = sshll.u32 %s3438_s27, 4  ;;  %s89_s30 = sshll.u32 %s3439_s29, 4  ;;  %s62_s28 = int_to_ptr.vmem [resolvable:$true] %s61_s28  ;;  %s90_s30 = int_to_ptr.vmem [resolvable:$true] %s89_s30 }
  0x18   :  { %s3247_s13 = scalar_lea.hbm %s3809_s3, 1024 }
  0x19   :  { %p3248_p8 = scmp.ne.s32.totalorder %s3809_s3, %s3247_s13  ;;  %p3251_p9 = scmp.lt.u32.totalorder %s3247_s13, %s3809_s3 }
  0x1b   :  { %p3253_p10 = pnand %p3251_p9, %p3248_p8 }
  0x1d   :  { %3256 = shalt.err (!%p3253_p10)
}
  0x1e   :  { %s3257_s1 = scalar_lea.vmem %s62_s28, 1024  ;;  %p3262_p12 = scmp.lt.s32.totalorder %s62_s28, %s62_s28 }
  0x1f   :  { %p3258_p11 = scmp.ne.s32.totalorder %s62_s28, %s3257_s1  ;;  %p3263_p13 = scmp.lt.s32.totalorder %s3257_s1, %s3257_s1 }
  0x21   :  { %p3264_p0 = por %p3263_p13, %p3262_p12 }
  0x23   :  { %p3265_p1 = pnand %p3264_p0, %p3258_p11 }
  0x25   :  { %3268 = shalt.err (!%p3265_p1)
}
  0x26   :  { %s3440_s14 = smov 64   ;;  %s3441_s19 = smov 4  }
  0x27   :  { %67 = dma.hbm_to_vmem [thread:$0]  %s3809_s3, 1024, %s62_s28, [#allocation9], %s3440_s14, %s3440_s14, %s3441_s19  }
  0x28   :  { %s3269_s24 = scalar_lea.hbm %s3813_s7, 10240 }
  0x29   :  { %p3270_p2 = scmp.ne.s32.totalorder %s3813_s7, %s3269_s24  ;;  %p3273_p3 = scmp.lt.u32.totalorder %s3269_s24, %s3813_s7 }
  0x2b   :  { %p3275_p4 = pnand %p3273_p3, %p3270_p2 }
  0x2d   :  { %3278 = shalt.err (!%p3275_p4)
}
  0x2e   :  { %s3279_s11 = scalar_lea.vmem %s90_s30, 10240  ;;  %p3284_p6 = scmp.lt.s32.totalorder %s90_s30, %s90_s30 }
  0x2f   :  { %p3280_p5 = scmp.ne.s32.totalorder %s90_s30, %s3279_s11  ;;  %p3285_p7 = scmp.lt.s32.totalorder %s3279_s11, %s3279_s11 }
  0x31   :  { %p3286_p8 = por %p3285_p7, %p3284_p6 }
  0x33   :  { %p3287_p9 = pnand %p3286_p8, %p3280_p5 }
  0x35   :  { %3290 = shalt.err (!%p3287_p9)
}
  0x36   :  { %95 = dma.hbm_to_vmem [thread:$0]  %s3813_s7, 10240, %s90_s30, [#allocation12], %s3440_s14, %s3440_s14, %s3441_s19  }
  0x37   :  { %s3442_s12 = smov [#allocation2]   ;;  %s3443_s15 = smov [#allocation7]  }
  0x38   :  { %s27_s13 = sshll.u32 %s3442_s12, 4  ;;  %s52_s16 = sshll.u32 %s3443_s15, 4  ;;  %s28_s13 = int_to_ptr.vmem [resolvable:$true] %s27_s13  ;;  %s53_s16 = int_to_ptr.vmem [resolvable:$true] %s52_s16 }
  0x39   :  { %s3291_s1 = scalar_lea.hbm %s3806_s0, 128 }
  0x3a   :  { %p3292_p10 = scmp.ne.s32.totalorder %s3806_s0, %s3291_s1  ;;  %p3295_p11 = scmp.lt.u32.totalorder %s3291_s1, %s3806_s0 }
  0x3c   :  { %p3297_p12 = pnand %p3295_p11, %p3292_p10 }
  0x3e   :  { %3300 = shalt.err (!%p3297_p12)
}
  0x3f   :  { %s3301_s7 = scalar_lea.vmem %s28_s13, 128  ;;  %p3306_p0 = scmp.lt.s32.totalorder %s28_s13, %s28_s13 }
  0x40   :  { %p3302_p13 = scmp.ne.s32.totalorder %s28_s13, %s3301_s7  ;;  %p3307_p1 = scmp.lt.s32.totalorder %s3301_s7, %s3301_s7 }
  0x42   :  { %p3308_p2 = por %p3307_p1, %p3306_p0 }
  0x44   :  { %p3309_p3 = pnand %p3308_p2, %p3302_p13 }
  0x46   :  { %3312 = shalt.err (!%p3309_p3)
}
  0x47   :  { %33 = dma.hbm_to_vmem [thread:$0]  %s3806_s0, 128, %s28_s13, [#allocation3], %s3440_s14, %s3440_s14, %s3441_s19  }
  0x48   :  { %s3313_s27 = scalar_lea.hbm %s3808_s2, 192 }
  0x49   :  { %p3314_p4 = scmp.ne.s32.totalorder %s3808_s2, %s3313_s27  ;;  %p3317_p5 = scmp.lt.u32.totalorder %s3313_s27, %s3808_s2 }
  0x4b   :  { %p3319_p6 = pnand %p3317_p5, %p3314_p4 }
  0x4d   :  { %3322 = shalt.err (!%p3319_p6)
}
  0x4e   :  { %s3323_s12 = scalar_lea.vmem %s53_s16, 192  ;;  %p3328_p8 = scmp.lt.s32.totalorder %s53_s16, %s53_s16 }
  0x4f   :  { %p3324_p7 = scmp.ne.s32.totalorder %s53_s16, %s3323_s12  ;;  %p3329_p9 = scmp.lt.s32.totalorder %s3323_s12, %s3323_s12 }
  0x51   :  { %p3330_p10 = por %p3329_p9, %p3328_p8 }
  0x53   :  { %p3331_p11 = pnand %p3330_p10, %p3324_p7 }
  0x55   :  { %3334 = shalt.err (!%p3331_p11)
}
  0x56   :  { %55 = dma.hbm_to_vmem [thread:$0]  %s3808_s2, 192, %s53_s16, [#allocation6]  }
  0x57   :  { %s3444_s15 = smov [#allocation10]   ;;  %s3445_s18 = smov [#allocation13]  }
  0x58   :  { %s75_s17 = sshll.u32 %s3444_s15, 4  ;;  %s101_s1 = sshll.u32 %s3445_s18, 4  ;;  %s76_s17 = int_to_ptr.vmem [resolvable:$true] %s75_s17  ;;  %s102_s1 = int_to_ptr.vmem [resolvable:$true] %s101_s1 }
  0x59   :  { %s3335_s22 = scalar_lea.hbm %s3811_s5, 1024 }
  0x5a   :  { %p3336_p12 = scmp.ne.s32.totalorder %s3811_s5, %s3335_s22  ;;  %p3339_p13 = scmp.lt.u32.totalorder %s3335_s22, %s3811_s5 }
  0x5c   :  { %p3341_p0 = pnand %p3339_p13, %p3336_p12 }
  0x5e   :  { %3344 = shalt.err (!%p3341_p0)
}
  0x5f   :  { %s3345_s2 = scalar_lea.vmem %s76_s17, 1024  ;;  %p3350_p2 = scmp.lt.s32.totalorder %s76_s17, %s76_s17 }
  0x60   :  { %p3346_p1 = scmp.ne.s32.totalorder %s76_s17, %s3345_s2  ;;  %p3351_p3 = scmp.lt.s32.totalorder %s3345_s2, %s3345_s2 }
  0x62   :  { %p3352_p4 = por %p3351_p3, %p3350_p2 }
  0x64   :  { %p3353_p5 = pnand %p3352_p4, %p3346_p1 }
  0x66   :  { %3356 = shalt.err (!%p3353_p5)
}
  0x67   :  { %81 = dma.hbm_to_vmem [thread:$0]  %s3811_s5, 1024, %s76_s17, [#allocation9], %s3440_s14, %s3440_s14, %s3441_s19  }
  0x68   :  { %s3357_s29 = scalar_lea.hbm %s3814_s8, 1024 }
  0x69   :  { %p3358_p6 = scmp.ne.s32.totalorder %s3814_s8, %s3357_s29  ;;  %p3361_p7 = scmp.lt.u32.totalorder %s3357_s29, %s3814_s8 }
  0x6b   :  { %p3363_p8 = pnand %p3361_p7, %p3358_p6 }
  0x6d   :  { %3366 = shalt.err (!%p3363_p8)
}
  0x6e   :  { %s3367_s0 = scalar_lea.vmem %s102_s1, 1024  ;;  %p3372_p10 = scmp.lt.s32.totalorder %s102_s1, %s102_s1 }
  0x6f   :  { %p3368_p9 = scmp.ne.s32.totalorder %s102_s1, %s3367_s0  ;;  %p3373_p11 = scmp.lt.s32.totalorder %s3367_s0, %s3367_s0 }
  0x71   :  { %p3374_p12 = por %p3373_p11, %p3372_p10 }
  0x73   :  { %p3375_p13 = pnand %p3374_p12, %p3368_p9 }
  0x75   :  { %3378 = shalt.err (!%p3375_p13)
}
  0x76   :  { %107 = dma.hbm_to_vmem [thread:$0]  %s3814_s8, 1024, %s102_s1, [#allocation12], %s3440_s14, %s3440_s14, %s3441_s19  }
  0x77   :  { %3423 = dma.done.wait [#allocation3], 128  }
  0x78   :  { %3424 = vsyncadd [#allocation3], 4294967168 }
  0x79   :  { %3425 = dma.done.wait [#allocation6], 12480  }
  0x7a   :  { %3426 = vsyncadd [#allocation6], 4294954816 }
  0x7b   :  { %3427 = dma.done.wait [#allocation9], 2048  }
  0x7c   :  { %3428 = vsyncadd [#allocation9], 4294965248 }
  0x7d   :  { %3429 = dma.done.wait [#allocation12], 11264  }
  0x7e   :  { %3430 = vsyncadd [#allocation12], 4294956032  ;;  %v3446_v0 = vmov 0   ;;  %v2912_v1 = vld [vmem:[#allocation5 + $0x4] ss:$48 sps:$4 sm:$0xff]   ;;  %v3614_v29 = vld [vmem:[#allocation2] sm:$0xff]  }
  0x7f   :  { %810 = vmatprep.mubr.bf16.mxu0 %v3446_v0  ;;  %853 = vmatprep.mubr.bf16.mxu1 %v3446_v0  ;;  %v2914_v2 = vld [vmem:[#allocation5] ss:$48 sps:$4 sm:$0xff]   ;;  %v2915_v3 = vld [vmem:[#allocation5 + $0x64] ss:$48 sps:$4 sm:$0xff]   ;;  %v2937_v10 = vld [vmem:[#allocation5 + $0xc] ss:$48 sps:$4 sm:$0xff]  }
  0x80   :  { %2902 = vset.pattern.permute.xlu0 %v3446_v0  ;;  %778 = vmatprep.subr.bf16.mxu0 %v2912_v1  ;;  %v2917_v4 = vld [vmem:[#allocation5 + $0x60] ss:$48 sps:$4 sm:$0xff]   ;;  %v2918_v5 = vld [vmem:[#allocation5 + $0xc4] ss:$48 sps:$4 sm:$0xff]   ;;  %v2939_v11 = vld [vmem:[#allocation5 + $0x8] ss:$48 sps:$4 sm:$0xff]  }
  0x81   :  { %779 = vmatpush1.bf16.msra.mxu0 %v2914_v2  ;;  %v2920_v6 = vld [vmem:[#allocation5 + $0xc0] ss:$48 sps:$4 sm:$0xff]   ;;  %v2921_v7 = vld [vmem:[#allocation5 + $0x124] ss:$48 sps:$4 sm:$0xff]   ;;  %v2940_v12 = vld [vmem:[#allocation5 + $0x6c] ss:$48 sps:$4 sm:$0xff]   ;;  %821 = vmatprep.subr.bf16.mxu1 %v2937_v10 }
  0x82   :  { %780 = vmatprep.subr.bf16.mxu0 %v2915_v3  ;;  %v2923_v8 = vld [vmem:[#allocation5 + $0x120] ss:$48 sps:$4 sm:$0xff]   ;;  %v2924_v9 = vld [vmem:[#allocation5 + $0x184] ss:$48 sps:$4 sm:$0xff]   ;;  %822 = vmatpush1.bf16.msra.mxu1 %v2939_v11  ;;  %v2942_v14 = vld [vmem:[#allocation5 + $0x68] ss:$48 sps:$4 sm:$0xff]  }
  0x83   :  { %v2926_v13 = vld [vmem:[#allocation5 + $0x180] ss:$48 sps:$4 sm:$0xff]   ;;  %v2927_v15 = vld [vmem:[#allocation5 + $0x1e4] ss:$48 sps:$4 sm:$0xff]   ;;  %823 = vmatprep.subr.bf16.mxu1 %v2940_v12  ;;  %v2943_v16 = vld [vmem:[#allocation5 + $0xcc] ss:$48 sps:$4 sm:$0xff]  }
  0x84   :  { %v2929_v17 = vld [vmem:[#allocation5 + $0x1e0] ss:$48 sps:$4 sm:$0xff]   ;;  %v2945_v18 = vld [vmem:[#allocation5 + $0xc8] ss:$48 sps:$4 sm:$0xff]   ;;  %v2930_v19 = vld [vmem:[#allocation5 + $0x244] ss:$48 sps:$4 sm:$0xff]  }
  0x85   :  { %781 = vmatpush1.bf16.msra.mxu0 %v2917_v4  ;;  %v2946_v20 = vld [vmem:[#allocation5 + $0x12c] ss:$48 sps:$4 sm:$0xff]   ;;  %v2932_v21 = vld [vmem:[#allocation5 + $0x240] ss:$48 sps:$4 sm:$0xff]   ;;  %v2948_v22 = vld [vmem:[#allocation5 + $0x128] ss:$48 sps:$4 sm:$0xff]  }
  0x86   :  { %782 = vmatprep.subr.bf16.mxu0 %v2918_v5  ;;  %824 = vmatpush1.bf16.msra.mxu1 %v2942_v14  ;;  %v2933_v23 = vld [vmem:[#allocation5 + $0x2a4] ss:$48 sps:$4 sm:$0xff]   ;;  %v2949_v24 = vld [vmem:[#allocation5 + $0x18c] ss:$48 sps:$4 sm:$0xff]   ;;  %v2935_v25 = vld [vmem:[#allocation5 + $0x2a0] ss:$48 sps:$4 sm:$0xff]  }
  0x87   :  { %825 = vmatprep.subr.bf16.mxu1 %v2943_v16  ;;  %v2951_v26 = vld [vmem:[#allocation5 + $0x188] ss:$48 sps:$4 sm:$0xff]   ;;  %v2952_v27 = vld [vmem:[#allocation5 + $0x1ec] ss:$48 sps:$4 sm:$0xff]   ;;  %v2963_v28 = vld [vmem:[#allocation5 + $0x14] ss:$48 sps:$4 sm:$0xff]  }
  0x88   :  { %v2954_v30 = vld [vmem:[#allocation5 + $0x1e8] ss:$48 sps:$4 sm:$0xff]   ;;  %v2961_v31 = vld [vmem:[#allocation5 + $0x10] ss:$48 sps:$4 sm:$0xff]   ;;  %v2955_v32 = vld [vmem:[#allocation5 + $0x24c] ss:$48 sps:$4 sm:$0xff]  }
  0x89   :  { %783 = vmatpush1.bf16.msra.mxu0 %v2920_v6  ;;  %v2966_v33 = vld [vmem:[#allocation5 + $0x74] ss:$48 sps:$4 sm:$0xff]   ;;  %v2957_v34 = vld [vmem:[#allocation5 + $0x248] ss:$48 sps:$4 sm:$0xff]   ;;  %v2964_v35 = vld [vmem:[#allocation5 + $0x70] ss:$48 sps:$4 sm:$0xff]  }
  0x8a   :  { %784 = vmatprep.subr.bf16.mxu0 %v2921_v7  ;;  %826 = vmatpush1.bf16.msra.mxu1 %v2945_v18  ;;  %v2958_v36 = vld [vmem:[#allocation5 + $0x2ac] ss:$48 sps:$4 sm:$0xff]   ;;  %v2969_v37 = vld [vmem:[#allocation5 + $0xd4] ss:$48 sps:$4 sm:$0xff]   ;;  %v2960_v38 = vld [vmem:[#allocation5 + $0x2a8] ss:$48 sps:$4 sm:$0xff]  }
  0x8b   :  { %827 = vmatprep.subr.bf16.mxu1 %v2946_v20  ;;  %v2967_v39 = vld [vmem:[#allocation5 + $0xd0] ss:$48 sps:$4 sm:$0xff]   ;;  %v2972_v40 = vld [vmem:[#allocation5 + $0x134] ss:$48 sps:$4 sm:$0xff]   ;;  %v2981_v41 = vld [vmem:[#allocation5 + $0x1c] ss:$48 sps:$4 sm:$0xff]  }
  0x8c   :  { %v2970_v42 = vld [vmem:[#allocation5 + $0x130] ss:$48 sps:$4 sm:$0xff]   ;;  %v2979_v43 = vld [vmem:[#allocation5 + $0x18] ss:$48 sps:$4 sm:$0xff]   ;;  %v2975_v44 = vld [vmem:[#allocation5 + $0x194] ss:$48 sps:$4 sm:$0xff]  }
  0x8d   :  { %785 = vmatpush1.bf16.msra.mxu0 %v2923_v8  ;;  %v2987_v45 = vld [vmem:[#allocation5 + $0x7c] ss:$48 sps:$4 sm:$0xff]   ;;  %v2973_v46 = vld [vmem:[#allocation5 + $0x190] ss:$48 sps:$4 sm:$0xff]   ;;  %v2985_v47 = vld [vmem:[#allocation5 + $0x78] ss:$48 sps:$4 sm:$0xff]  }
  0x8e   :  { %786 = vmatprep.subr.bf16.mxu0 %v2924_v9  ;;  %828 = vmatpush1.bf16.msra.mxu1 %v2948_v22  ;;  %v2978_v48 = vld [vmem:[#allocation5 + $0x1f4] ss:$48 sps:$4 sm:$0xff]   ;;  %v2993_v49 = vld [vmem:[#allocation5 + $0xdc] ss:$48 sps:$4 sm:$0xff]   ;;  %v2976_v50 = vld [vmem:[#allocation5 + $0x1f0] ss:$48 sps:$4 sm:$0xff]  }
  0x8f   :  { %829 = vmatprep.subr.bf16.mxu1 %v2949_v24  ;;  %v2991_v51 = vld [vmem:[#allocation5 + $0xd8] ss:$48 sps:$4 sm:$0xff]   ;;  %v2984_v52 = vld [vmem:[#allocation5 + $0x254] ss:$48 sps:$4 sm:$0xff]   ;;  %v2996_v53 = vld [vmem:[#allocation5 + $0x13c] ss:$48 sps:$4 sm:$0xff]  }
  0x90   :  { %v2982_v54 = vld [vmem:[#allocation5 + $0x250] ss:$48 sps:$4 sm:$0xff]   ;;  %v2994_v55 = vld [vmem:[#allocation5 + $0x138] ss:$48 sps:$4 sm:$0xff]   ;;  %v2990_v56 = vld [vmem:[#allocation5 + $0x2b4] ss:$48 sps:$4 sm:$0xff]  }
  0x91   :  { %787 = vmatpush1.bf16.msra.mxu0 %v2926_v13  ;;  %v3002_v57 = vld [vmem:[#allocation5 + $0x19c] ss:$48 sps:$4 sm:$0xff]   ;;  %v2988_v58 = vld [vmem:[#allocation5 + $0x2b0] ss:$48 sps:$4 sm:$0xff]   ;;  %v3000_v59 = vld [vmem:[#allocation5 + $0x198] ss:$48 sps:$4 sm:$0xff]  }
  0x92   :  { %788 = vmatprep.subr.bf16.mxu0 %v2927_v15  ;;  %830 = vmatpush1.bf16.msra.mxu1 %v2951_v26  ;;  %v2999_v60 = vld [vmem:[#allocation5 + $0x24] ss:$48 sps:$4 sm:$0xff]   ;;  %v3008_v61 = vld [vmem:[#allocation5 + $0x1fc] ss:$48 sps:$4 sm:$0xff]   ;;  %v2997_v62 = vld [vmem:[#allocation5 + $0x20] ss:$48 sps:$4 sm:$0xff]  }
  0x93   :  { %831 = vmatprep.subr.bf16.mxu1 %v2952_v27  ;;  %v3006_v63 = vld [vmem:[#allocation5 + $0x1f8] ss:$48 sps:$4 sm:$0xff]   ;;  %v3005_v1 = vld [vmem:[#allocation5 + $0x84] ss:$48 sps:$4 sm:$0xff]   ;;  %v3014_v2 = vld [vmem:[#allocation5 + $0x25c] ss:$48 sps:$4 sm:$0xff]  }
  0x94   :  { %v3003_v3 = vld [vmem:[#allocation5 + $0x80] ss:$48 sps:$4 sm:$0xff]   ;;  %v3011_v4 = vld [vmem:[#allocation5 + $0xe4] ss:$48 sps:$4 sm:$0xff]   ;;  %v3012_v5 = vld [vmem:[#allocation5 + $0x258] ss:$48 sps:$4 sm:$0xff]  }
  0x95   :  { %789 = vmatpush1.bf16.msra.mxu0 %v2929_v17  ;;  %v3020_v6 = vld [vmem:[#allocation5 + $0x2bc] ss:$48 sps:$4 sm:$0xff]   ;;  %v3009_v7 = vld [vmem:[#allocation5 + $0xe0] ss:$48 sps:$4 sm:$0xff]   ;;  %v3018_v8 = vld [vmem:[#allocation5 + $0x2b8] ss:$48 sps:$4 sm:$0xff]  }
  0x96   :  { %790 = vmatprep.subr.bf16.mxu0 %v2930_v19  ;;  %832 = vmatpush1.bf16.msra.mxu1 %v2954_v30  ;;  %v3017_v9 = vld [vmem:[#allocation5 + $0x144] ss:$48 sps:$4 sm:$0xff]   ;;  %v3029_v10 = vld [vmem:[#allocation5 + $0x2c] ss:$48 sps:$4 sm:$0xff]   ;;  %v3015_v11 = vld [vmem:[#allocation5 + $0x140] ss:$48 sps:$4 sm:$0xff]  }
  0x97   :  { %833 = vmatprep.subr.bf16.mxu1 %v2955_v32  ;;  %v3027_v12 = vld [vmem:[#allocation5 + $0x28] ss:$48 sps:$4 sm:$0xff]   ;;  %v3023_v13 = vld [vmem:[#allocation5 + $0x1a4] ss:$48 sps:$4 sm:$0xff]   ;;  %v3035_v14 = vld [vmem:[#allocation5 + $0x8c] ss:$48 sps:$4 sm:$0xff]  }
  0x98   :  { %v3021_v15 = vld [vmem:[#allocation5 + $0x1a0] ss:$48 sps:$4 sm:$0xff]   ;;  %v3033_v16 = vld [vmem:[#allocation5 + $0x88] ss:$48 sps:$4 sm:$0xff]   ;;  %v3026_v17 = vld [vmem:[#allocation5 + $0x204] ss:$48 sps:$4 sm:$0xff]  }
  0x99   :  { %791 = vmatpush1.bf16.msra.mxu0 %v2932_v21  ;;  %v3041_v18 = vld [vmem:[#allocation5 + $0xec] ss:$48 sps:$4 sm:$0xff]   ;;  %v3024_v19 = vld [vmem:[#allocation5 + $0x200] ss:$48 sps:$4 sm:$0xff]   ;;  %v3039_v20 = vld [vmem:[#allocation5 + $0xe8] ss:$48 sps:$4 sm:$0xff]  }
  0x9a   :  { %792 = vmatprep.subr.bf16.mxu0 %v2933_v23  ;;  %834 = vmatpush1.bf16.msra.mxu1 %v2957_v34  ;;  %v3032_v21 = vld [vmem:[#allocation5 + $0x264] ss:$48 sps:$4 sm:$0xff]   ;;  %v3044_v22 = vld [vmem:[#allocation5 + $0x14c] ss:$48 sps:$4 sm:$0xff]   ;;  %v3030_v23 = vld [vmem:[#allocation5 + $0x260] ss:$48 sps:$4 sm:$0xff]  }
  0x9b   :  { %835 = vmatprep.subr.bf16.mxu1 %v2958_v36  ;;  %v3042_v24 = vld [vmem:[#allocation5 + $0x148] ss:$48 sps:$4 sm:$0xff]   ;;  %v3047_v26 = vld [vmem:[#allocation5 + $0x1ac] ss:$48 sps:$4 sm:$0xff]   ;;  %v3036_v27 = vld [vmem:[#allocation5 + $0x2c0] ss:$48 sps:$4 sm:$0xff]  }
  0x9c   :  { %v3050_v30 = vld [vmem:[#allocation5 + $0x20c] ss:$48 sps:$4 sm:$0xff]   ;;  %v3447_v34 = vmov 0.0   ;;  %v3059_v36 = vld [vmem:[#allocation8 + $0x8] sm:$0xff]   ;;  %vm3448_vm0 = vmmov 0  }
  0x9d   :  { %793 = vmatpush1.bf16.msra.mxu0 %v2935_v25  ;;  %v3038_v25 = vld [vmem:[#allocation5 + $0x2c4] ss:$48 sps:$4 sm:$0xff]   ;;  %v3057_v32 = vld [vmem:[#allocation8] sm:$0xff]  }
  0x9e   :  { %864 = vmatprep.subr.bf16.mxu0 %v2963_v28  ;;  %836 = vmatpush1.bf16.msra.mxu1 %v2960_v38  ;;  %v3045_v28 = vld [vmem:[#allocation5 + $0x1a8] ss:$48 sps:$4 sm:$0xff]  }
  0x9f   :  { %907 = vmatprep.subr.bf16.mxu1 %v2981_v41  ;;  %v3054_v38 = vld [vmem:[#allocation5 + $0x2c8] ss:$48 sps:$4 sm:$0xff]   ;;  %v3061_v41 = vld [vmem:[#allocation8 + $0x10] sm:$0xff]  }
  0xa0   :  { %811 = vmatmul.mubr.bf16.vlgmr.msra.gmra.mrb[0].mxu0 %v3614_v29 }
  0xa1   :  { %865 = vmatpush1.bf16.msra.mxu0 %v2961_v31  ;;  %896 = vmatprep.mubr.bf16.mxu0 %v3446_v0  ;;  %v3048_v31 = vld [vmem:[#allocation5 + $0x208] ss:$48 sps:$4 sm:$0xff]  }
  0xa2   :  { %866 = vmatprep.subr.bf16.mxu0 %v2966_v33  ;;  %854 = vmatmul.mubr.bf16.vlgmr.msra.gmra.mrb[0].mxu1 %v3614_v29  ;;  %v3053_v33 = vld [vmem:[#allocation5 + $0x26c] ss:$48 sps:$4 sm:$0xff]  }
  0xa3   :  { %908 = vmatpush1.bf16.msra.mxu1 %v2979_v43  ;;  %939 = vmatprep.mubr.bf16.mxu1 %v3446_v0  ;;  %v3063_v43 = vld [vmem:[#allocation8 + $0x18] sm:$0xff]  }
  0xa4   :  { %909 = vmatprep.subr.bf16.mxu1 %v2987_v45  ;;  %v3066_v45 = vld [vmem:[#allocation10 + $0x20] sm:$0xff]  }
  0xa5   :  { %867 = vmatpush1.bf16.msra.mxu0 %v2964_v35  ;;  %v3051_v35 = vld [vmem:[#allocation5 + $0x268] ss:$48 sps:$4 sm:$0xff]  }
  0xa6   :  { %868 = vmatprep.subr.bf16.mxu0 %v2969_v37  ;;  %v3056_v37 = vld [vmem:[#allocation5 + $0x2cc] ss:$48 sps:$4 sm:$0xff]  }
  0xa7   :  { %910 = vmatpush1.bf16.msra.mxu1 %v2985_v47  ;;  %v3068_v47 = vld [vmem:[#allocation10 + $0x28] sm:$0xff]  }
  0xa8   :  { %911 = vmatprep.subr.bf16.mxu1 %v2993_v49  ;;  %v3070_v49 = vld [vmem:[#allocation10 + $0x30] sm:$0xff]  }
  0xa9   :  { %869 = vmatpush1.bf16.msra.mxu0 %v2967_v39  ;;  %v3058_v39 = vld [vmem:[#allocation10] sm:$0xff]  }
  0xaa   :  { %870 = vmatprep.subr.bf16.mxu0 %v2972_v40  ;;  %v3060_v40 = vld [vmem:[#allocation10 + $0x8] sm:$0xff]  }
  0xab   :  { %912 = vmatpush1.bf16.msra.mxu1 %v2991_v51  ;;  %v3072_v51 = vld [vmem:[#allocation10 + $0x38] sm:$0xff]  }
  0xac   :  { %913 = vmatprep.subr.bf16.mxu1 %v2996_v53  ;;  %v232_v53 = vlaneseq }
  0xad   :  { %871 = vmatpush1.bf16.msra.mxu0 %v2970_v42  ;;  %v3062_v42 = vld [vmem:[#allocation10 + $0x10] sm:$0xff]  }
  0xae   :  { %872 = vmatprep.subr.bf16.mxu0 %v2975_v44  ;;  %v3064_v44 = vld [vmem:[#allocation10 + $0x18] sm:$0xff]  }
  0xaf   :  { %914 = vmatpush1.bf16.msra.mxu1 %v2994_v55 }
  0xb0   :  { %915 = vmatprep.subr.bf16.mxu1 %v3002_v57 }
  0xb1   :  { %873 = vmatpush1.bf16.msra.mxu0 %v2973_v46  ;;  %v3067_v46 = vld [vmem:[#allocation8 + $0x28] sm:$0xff]  }
  0xb2   :  { %874 = vmatprep.subr.bf16.mxu0 %v2978_v48  ;;  %v3069_v48 = vld [vmem:[#allocation8 + $0x30] sm:$0xff]  }
  0xb3   :  { %916 = vmatpush1.bf16.msra.mxu1 %v3000_v59 }
  0xb4   :  { %917 = vmatprep.subr.bf16.mxu1 %v3008_v61 }
  0xb5   :  { %875 = vmatpush1.bf16.msra.mxu0 %v2976_v50  ;;  %v3071_v50 = vld [vmem:[#allocation8 + $0x38] sm:$0xff]  }
  0xb6   :  { %876 = vmatprep.subr.bf16.mxu0 %v2984_v52  ;;  %v3073_v52 = vld [vmem:[#allocation11 + $0x40] sm:$0xff]  }
  0xb7   :  { %918 = vmatpush1.bf16.msra.mxu1 %v3006_v63 }
  0xb8   :  { %919 = vmatprep.subr.bf16.mxu1 %v3014_v2 }
  0xb9   :  { %877 = vmatpush1.bf16.msra.mxu0 %v2982_v54  ;;  %v3648_v54 = vshrl.u32 %v232_v53, 7 }
  0xba   :  { %878 = vmatprep.subr.bf16.mxu0 %v2990_v56  ;;  %v3651_v56 = vld [vmem:[#allocation7] sm:$0xff] }
  0xbb   :  { %920 = vmatpush1.bf16.msra.mxu1 %v3012_v5  ;;  %v234_v55 = vsub.s32 0, %v3648_v54  ;;  %v238_v57 = vsub.s32 1, %v3648_v54 }
  0xbc   :  { %921 = vmatprep.subr.bf16.mxu1 %v3020_v6 }
  0xbd   :  { %879 = vmatpush1.bf16.msra.mxu0 %v2988_v58  ;;  %v235_v58 = vrot.slane %v3651_v56, %v234_v55  ;;  %v239_v59 = vrot.slane %v3651_v56, %v238_v57 }
  0xbe   :  { %950 = vmatprep.subr.bf16.mxu0 %v2999_v60 }
  0xbf   :  { %922 = vmatpush1.bf16.msra.mxu1 %v3018_v8  ;;  %v242_v8 = vsub.s32 2, %v3648_v54 }
  0xc0   :  { %897 = vmatmul.mubr.bf16.vlgmr.msra.gmra.mrb[4].mxu0 %v3614_v29  ;;  %993 = vmatprep.subr.bf16.mxu1 %v3029_v10  ;;  %v246_v10 = vsub.s32 3, %v3648_v54 }
  0xc1   :  { %951 = vmatpush1.bf16.msra.mxu0 %v2997_v62  ;;  %982 = vmatprep.mubr.bf16.mxu0 %v3446_v0 }
  0xc2   :  { %952 = vmatprep.subr.bf16.mxu0 %v3005_v1  ;;  %940 = vmatmul.mubr.bf16.vlgmr.msra.gmra.mrb[4].mxu1 %v3614_v29 }
  0xc3   :  { %994 = vmatpush1.bf16.msra.mxu1 %v3027_v12  ;;  %1025 = vmatprep.mubr.bf16.mxu1 %v3446_v0  ;;  %v247_v12 = vrot.slane %v3651_v56, %v246_v10 }
  0xc4   :  { %995 = vmatprep.subr.bf16.mxu1 %v3035_v14 }
  0xc5   :  { %953 = vmatpush1.bf16.msra.mxu0 %v3003_v3 }
  0xc6   :  { %954 = vmatprep.subr.bf16.mxu0 %v3011_v4 }
  0xc7   :  { %996 = vmatpush1.bf16.msra.mxu1 %v3033_v16 }
  0xc8   :  { %997 = vmatprep.subr.bf16.mxu1 %v3041_v18 }
  0xc9   :  { %955 = vmatpush1.bf16.msra.mxu0 %v3009_v7 }
  0xca   :  { %956 = vmatprep.subr.bf16.mxu0 %v3017_v9 }
  0xcb   :  { %998 = vmatpush1.bf16.msra.mxu1 %v3039_v20 }
  0xcc   :  { %999 = vmatprep.subr.bf16.mxu1 %v3044_v22 }
  0xcd   :  { %957 = vmatpush1.bf16.msra.mxu0 %v3015_v11  ;;  %v243_v11 = vrot.slane %v3651_v56, %v242_v8 }
  0xce   :  { %958 = vmatprep.subr.bf16.mxu0 %v3023_v13 }
  0xcf   :  { %1000 = vmatpush1.bf16.msra.mxu1 %v3042_v24 }
  0xd0   :  { %1001 = vmatprep.subr.bf16.mxu1 %v3047_v26 }
  0xd1   :  { %959 = vmatpush1.bf16.msra.mxu0 %v3021_v15 }
  0xd2   :  { %960 = vmatprep.subr.bf16.mxu0 %v3026_v17 }
  0xd3   :  { %1002 = vmatpush1.bf16.msra.mxu1 %v3045_v28 }
  0xd4   :  { %1003 = vmatprep.subr.bf16.mxu1 %v3050_v30 }
  0xd5   :  { %961 = vmatpush1.bf16.msra.mxu0 %v3024_v19 }
  0xd6   :  { %962 = vmatprep.subr.bf16.mxu0 %v3032_v21 }
  0xd7   :  { %1004 = vmatpush1.bf16.msra.mxu1 %v3048_v31 }
  0xd8   :  { %1005 = vmatprep.subr.bf16.mxu1 %v3053_v33 }
  0xd9   :  { %963 = vmatpush1.bf16.msra.mxu0 %v3030_v23 }
  0xda   :  { %964 = vmatprep.subr.bf16.mxu0 %v3038_v25 }
  0xdb   :  { %1006 = vmatpush1.bf16.msra.mxu1 %v3051_v35 }
  0xdc   :  { %1007 = vmatprep.subr.bf16.mxu1 %v3056_v37 }
  0xdd   :  { %965 = vmatpush1.bf16.msra.mxu0 %v3036_v27 }
  0xde   :  { %2820 = vmatprep.subr.bf16.mxu0 %v3447_v34 }
  0xdf   :  { %1008 = vmatpush1.bf16.msra.mxu1 %v3054_v38 }
  0xe0   :  { %983 = vmatmul.mubr.bf16.vlgmr.msra.gmra.mrb[8].mxu0 %v3614_v29  ;;  %2840 = vmatprep.subr.bf16.mxu1 %v3447_v34 }
  0xe1   :  { %2821 = vmatpush3.bf16.msra.mxu0 %v3057_v32  ;;  %2836 = vmatprep.mubr.msk.bf16.mxu0 %vm3448_vm0, %v3447_v34 }
  0xe2   :  { %2822 = vmatprep.subr.bf16.mxu0 %v3447_v34  ;;  %1026 = vmatmul.mubr.bf16.vlgmr.msra.gmra.mrb[8].mxu1 %v3614_v29  ;;  %v3065_v29 = vld [vmem:[#allocation8 + $0x20] sm:$0xff]  }
  0xe3   :  { %2841 = vmatpush3.bf16.msra.mxu1 %v3058_v39  ;;  %2856 = vmatprep.mubr.msk.bf16.mxu1 %vm3448_vm0, %v3447_v34 }
  0xe4   :  { %2842 = vmatprep.subr.bf16.mxu1 %v3447_v34 }
  0xe5   :  { %2823 = vmatpush3.bf16.msra.mxu0 %v3059_v36 }
  0xe6   :  { %2824 = vmatprep.subr.bf16.mxu0 %v3447_v34 }
  0xe7   :  { %2843 = vmatpush3.bf16.msra.mxu1 %v3060_v40 }
  0xe8   :  { %2844 = vmatprep.subr.bf16.mxu1 %v3447_v34 }
  0xe9   :  { %2825 = vmatpush3.bf16.msra.mxu0 %v3061_v41 }
  0xea   :  { %2826 = vmatprep.subr.bf16.mxu0 %v3447_v34 }
  0xeb   :  { %2845 = vmatpush3.bf16.msra.mxu1 %v3062_v42 }
  0xec   :  { %2846 = vmatprep.subr.bf16.mxu1 %v3447_v34 }
  0xed   :  { %2827 = vmatpush3.bf16.msra.mxu0 %v3063_v43  ;;  %v3074_v43 = vld [vmem:[#allocation11] sm:$0xff]  }
  0xee   :  { %2828 = vmatprep.subr.bf16.mxu0 %v3447_v34 }
  0xef   :  { %2847 = vmatpush3.bf16.msra.mxu1 %v3064_v44 }
  0xf0   :  { %2848 = vmatprep.subr.bf16.mxu1 %v3447_v34 }
  0xf1   :  { %2829 = vmatpush3.bf16.msra.mxu0 %v3065_v29  ;;  %v3075_v29 = vld [vmem:[#allocation11 + $0x48] sm:$0xff]  }
  0xf2   :  { %2830 = vmatprep.subr.bf16.mxu0 %v3447_v34 }
  0xf3   :  { %2849 = vmatpush3.bf16.msra.mxu1 %v3066_v45 }
  0xf4   :  { %2850 = vmatprep.subr.bf16.mxu1 %v3447_v34 }
  0xf5   :  { %2831 = vmatpush3.bf16.msra.mxu0 %v3067_v46  ;;  %v3076_v46 = vld [vmem:[#allocation11 + $0x8] sm:$0xff]  }
  0xf6   :  { %2832 = vmatprep.subr.bf16.mxu0 %v3447_v34 }
  0xf7   :  { %2851 = vmatpush3.bf16.msra.mxu1 %v3068_v47  ;;  %v250_v47 = vsub.s32 4, %v3648_v54 }
  0xf8   :  { %2852 = vmatprep.subr.bf16.mxu1 %v3447_v34 }
  0xf9   :  { %2833 = vmatpush3.bf16.msra.mxu0 %v3069_v48 }
  0xfa   :  { %2834 = vmatprep.subr.bf16.mxu0 %v3447_v34 }
  0xfb   :  { %2853 = vmatpush3.bf16.msra.mxu1 %v3070_v49  ;;  %v3077_v49 = vld [vmem:[#allocation11 + $0x50] sm:$0xff]  }
  0xfc   :  { %2854 = vmatprep.subr.bf16.mxu1 %v3447_v34 }
  0xfd   :  { %2835 = vmatpush3.bf16.msra.mxu0 %v3071_v50  ;;  %v254_v50 = vsub.s32 5, %v3648_v54 }
  0xfe   :  { %2701 = vmatprep.subr.bf16.mxu0 %v3073_v52 }
  0xff   :  { %2855 = vmatpush3.bf16.msra.mxu1 %v3072_v51 }
 0x100   :  { %2860 = vmatprep.subr.bf16.mxu1 %v3447_v34 }
 0x173   :  { %v812_v60 = vpop.f32.mrb[0].mxu0 }
 0x174   :  { %v813_v61 = vadd.f32 %v812_v60, %v235_v58  ;;  %v814_v62 = vpop.f32.mrb[1].mxu0 }
 0x175   :  { %v815_v63 = vadd.f32 %v814_v62, %v239_v59  ;;  %v816_v1 = vpop.f32.mrb[2].mxu0  ;;  %v855_v13 = vpop.f32.mrb[0].mxu1 }
 0x176   :  { %v1060_v2 = vmul.f32 0.70710677, %v813_v61  ;;  %v817_v3 = vadd.f32 %v816_v1, %v235_v58  ;;  %v818_v4 = vpop.f32.mrb[3].mxu0  ;;  %v856_v14 = vadd.f32 %v855_v13, %v243_v11  ;;  %v857_v15 = vpop.f32.mrb[1].mxu1  ;;  %v1036_v27 = vmul.f32 0.5, %v813_v61 }
 0x177   :  { %v1061_v5 = vmul.f32 0.70710677, %v815_v63  ;;  %v819_v6 = vadd.f32 %v818_v4, %v239_v59  ;;  %v858_v16 = vadd.f32 %v857_v15, %v247_v12  ;;  %v859_v17 = vpop.f32.mrb[2].mxu1  ;;  %v1037_v32 = vmul.f32 0.5, %v815_v63  ;;  %v3078_v63 = vld [vmem:[#allocation11 + $0x10] sm:$0xff]  }
 0x178   :  { %3161 = verf.f32 %v1060_v2  ;;  %v1072_v7 = vmul.f32 0.70710677, %v817_v3  ;;  %v1062_v19 = vmul.f32 0.70710677, %v856_v14  ;;  %v860_v20 = vadd.f32 %v859_v17, %v243_v11  ;;  %v861_v21 = vpop.f32.mrb[3].mxu1 }
 0x179   :  { %3163 = verf.f32 %v1061_v5  ;;  %v1073_v9 = vmul.f32 0.70710677, %v819_v6  ;;  %v1063_v24 = vmul.f32 0.70710677, %v858_v16  ;;  %v862_v25 = vadd.f32 %v861_v21, %v247_v12  ;;  %v3079_v5 = vld [vmem:[#allocation11 + $0x58] sm:$0xff]  }
 0x17a   :  { %3165 = verf.f32 %v1072_v7  ;;  %v1074_v30 = vmul.f32 0.70710677, %v860_v20  ;;  %v1048_v33 = vmul.f32 0.5, %v817_v3  ;;  %v1049_v36 = vmul.f32 0.5, %v819_v6 }
 0x17b   :  { %3167 = verf.f32 %v1073_v9  ;;  %v1075_v38 = vmul.f32 0.70710677, %v862_v25  ;;  %v1038_v48 = vmul.f32 0.5, %v856_v14  ;;  %v1039_v59 = vmul.f32 0.5, %v858_v16  ;;  %v3080_v14 = vld [vmem:[#allocation11 + $0x18] sm:$0xff]  }
 0x17c   :  { %3169 = verf.f32 %v1062_v19  ;;  %v1050_v60 = vmul.f32 0.5, %v860_v20  ;;  %v251_v1 = vrot.slane %v3651_v56, %v250_v47  ;;  %v1051_v4 = vmul.f32 0.5, %v862_v25  ;;  %v3081_v19 = vld [vmem:[#allocation11 + $0x60] sm:$0xff]  }
 0x17d   :  { %3171 = verf.f32 %v1063_v24  ;;  %v255_v6 = vrot.slane %v3651_v56, %v254_v50 }
 0x17e   :  { %3173 = verf.f32 %v1074_v30 }
 0x17f   :  { %3175 = verf.f32 %v1075_v38 }
 0x182   :  { %v3162_v18 = vpop.eup %3161 }
 0x183   :  { %v3164_v22 = vpop.eup %3163  ;;  %v1108_v23 = vadd.f32 1.0, %v3162_v18 }
 0x184   :  { %v3166_v26 = vpop.eup %3165  ;;  %v1109_v28 = vadd.f32 1.0, %v3164_v22 }
 0x185   :  { %v3168_v31 = vpop.eup %3167  ;;  %v1120_v35 = vadd.f32 1.0, %v3166_v26  ;;  %v1132_v39 = vmul.f32 %v1108_v23, %v1036_v27 }
 0x186   :  { %v1121_v37 = vadd.f32 1.0, %v3168_v31  ;;  %v1133_v41 = vmul.f32 %v1109_v28, %v1037_v32  ;;  %v3170_v51 = vpop.eup %3169  ;;  %v3082_v28 = vld [vmem:[#allocation11 + $0x20] sm:$0xff]   ;;  %v258_v31 = vsub.s32 6, %v3648_v54  ;;  %v3083_v32 = vld [vmem:[#allocation11 + $0x68] sm:$0xff]  }
 0x187   :  { %v1144_v40 = vmul.f32 %v1120_v35, %v1048_v33  ;;  %v3172_v52 = vpop.eup %3171  ;;  %v1110_v58 = vadd.f32 1.0, %v3170_v51  ;;  %v3084_v35 = vld [vmem:[#allocation11 + $0x28] sm:$0xff]  }
 0x188   :  { %v1145_v42 = vmul.f32 %v1121_v37, %v1049_v36  ;;  %v3174_v61 = vpop.eup %3173  ;;  %v1111_v62 = vadd.f32 1.0, %v3172_v52  ;;  %v259_v36 = vrot.slane %v3651_v56, %v258_v31  ;;  %v3085_v37 = vld [vmem:[#allocation11 + $0x70] sm:$0xff]  }
 0x189   :  { %v1156_v44 = vpack.c.bf16 %v1144_v40, %v1132_v39  ;;  %v3673_v2 = vmul.f32 %v1110_v58, %v1038_v48  ;;  %v1122_v3 = vadd.f32 1.0, %v3174_v61  ;;  %v3176_v7 = vpop.eup %3175  ;;  %v3086_v39 = vld [vmem:[#allocation11 + $0x30] sm:$0xff]   ;;  %v3088_v58 = vld [vmem:[#allocation11 + $0x38] sm:$0xff]  }
 0x18a   :  { %v1292_v45 = vpack.c.bf16 %v1145_v42, %v1133_v41  ;;  %v1135_v9 = vmul.f32 %v1111_v62, %v1039_v59  ;;  %v1123_v12 = vadd.f32 1.0, %v3176_v7  ;;  %v3087_v42 = vld [vmem:[#allocation11 + $0x78] sm:$0xff]   ;;  %v3090_v7 = vld [vmem:[#allocation11 + $0x80] sm:$0xff]  }
 0x18b   :  { %2837 = vmatmul.mubr.bf16.vlgmr.msra.gmra.mrb[12].mxu0 %v1156_v44  ;;  %v3676_v11 = vmul.f32 %v1122_v3, %v1050_v60 }
 0x18c   :  { %2857 = vmatmul.mubr.bf16.vlgmr.msra.gmra.mrb[12].mxu1 %v1292_v45  ;;  %2702 = vmatpush3.bf16.msra.mxu0 %v3074_v43  ;;  %v1147_v18 = vmul.f32 %v1123_v12, %v1051_v4  ;;  %v3091_v12 = vld [vmem:[#allocation11 + $0xc8] sm:$0xff]  }
 0x18d   :  { %2703 = vmatprep.subr.bf16.mxu0 %v3075_v29  ;;  %2876 = vmatprep.mubr.msk.bf16.mxu1 %vm3448_vm0, %v3447_v34  ;;  %v1436_v17 = vpack.c.bf16 %v3676_v11, %v3673_v2 }
 0x18e   :  { %v1437_v25 = vpack.c.bf16 %v1147_v18, %v1135_v9  ;;  %v229_v18 = vld [vmem:[#allocation7 + $0x8] sm:$0xf] }
 0x18f   :  { %v271_v2 = vrot.slane %v229_v18, %v238_v57 }
 0x190   :  { %2704 = vmatpush3.bf16.msra.mxu0 %v3076_v46  ;;  %1598 = vmatprep.mubr.bf16.mxu0 %v1437_v25  ;;  %v267_v25 = vrot.slane %v229_v18, %v234_v55 }
 0x191   :  { %2705 = vmatprep.subr.bf16.mxu0 %v3077_v49 }
 0x193   :  { %v898_v13 = vpop.f32.mrb[4].mxu0 }
 0x194   :  { %2706 = vmatpush3.bf16.msra.mxu0 %v3078_v63  ;;  %v899_v15 = vadd.f32 %v898_v13, %v251_v1  ;;  %v900_v16 = vpop.f32.mrb[5].mxu0  ;;  %v3089_v63 = vld [vmem:[#allocation11 + $0xc0] sm:$0xff]  }
 0x195   :  { %2707 = vmatprep.subr.bf16.mxu0 %v3079_v5  ;;  %v901_v20 = vadd.f32 %v900_v16, %v255_v6  ;;  %v902_v21 = vpop.f32.mrb[6].mxu0  ;;  %v941_v38 = vpop.f32.mrb[4].mxu1  ;;  %v3093_v16 = vld [vmem:[#allocation11 + $0xd0] sm:$0xff]  }
 0x196   :  { %v1064_v22 = vmul.f32 0.70710677, %v899_v15  ;;  %v903_v23 = vadd.f32 %v902_v21, %v251_v1  ;;  %v904_v24 = vpop.f32.mrb[7].mxu0  ;;  %v942_v40 = vadd.f32 %v941_v38, %v259_v36  ;;  %v3682_v41 = vpop.f32.mrb[5].mxu1  ;;  %v1040_v43 = vmul.f32 0.5, %v899_v15  ;;  %v3092_v15 = vld [vmem:[#allocation11 + $0x88] sm:$0xff]  }
 0x197   :  { %v1065_v26 = vmul.f32 0.70710677, %v901_v20  ;;  %v905_v27 = vadd.f32 %v904_v24, %v255_v6  ;;  %v945_v44 = vpop.f32.mrb[6].mxu1  ;;  %v1041_v45 = vmul.f32 0.5, %v901_v20  ;;  %v3094_v24 = vld [vmem:[#allocation11 + $0x90] sm:$0xff]  }
 0x198   :  { %2708 = vmatpush3.bf16.msra.mxu0 %v3080_v14  ;;  %3177 = verf.f32 %v1064_v22  ;;  %v1076_v30 = vmul.f32 0.70710677, %v903_v23  ;;  %v1066_v46 = vmul.f32 0.70710677, %v942_v40  ;;  %v946_v47 = vadd.f32 %v945_v44, %v259_v36  ;;  %v3684_v48 = vpop.f32.mrb[7].mxu1  ;;  %v3099_v44 = vld [vmem:[#allocation11 + $0xe8] sm:$0xff]  }
 0x199   :  { %2709 = vmatprep.subr.bf16.mxu0 %v3081_v19  ;;  %3179 = verf.f32 %v1065_v26  ;;  %v1077_v33 = vmul.f32 0.70710677, %v905_v27  ;;  %v1052_v51 = vmul.f32 0.5, %v903_v23  ;;  %v1053_v60 = vmul.f32 0.5, %v905_v27  ;;  %v3095_v26 = vld [vmem:[#allocation11 + $0xd8] sm:$0xff]  }
 0x19a   :  { %3181 = verf.f32 %v1076_v30  ;;  %v1078_v61 = vmul.f32 0.70710677, %v946_v47  ;;  %v1042_v19 = vmul.f32 0.5, %v942_v40  ;;  %v1054_v22 = vmul.f32 0.5, %v946_v47  ;;  %v3096_v30 = vld [vmem:[#allocation11 + $0x98] sm:$0xff]   ;;  %v3101_v47 = vld [vmem:[#allocation11 + $0xf0] sm:$0xff]  }
 0x19b   :  { %3183 = verf.f32 %v1077_v33  ;;  %v3097_v33 = vld [vmem:[#allocation11 + $0xe0] sm:$0xff]  }
 0x19c   :  { %2710 = vmatpush3.bf16.msra.mxu0 %v3082_v28  ;;  %3185 = verf.f32 %v1066_v46  ;;  %v275_v46 = vrot.slane %v229_v18, %v242_v8 }
 0x19d   :  { %2711 = vmatprep.subr.bf16.mxu0 %v3083_v32  ;;  %3187 = verf.f32 %v1078_v61 }
 0x1a0   :  { %2712 = vmatpush3.bf16.msra.mxu0 %v3084_v35 }
 0x1a1   :  { %2713 = vmatprep.subr.bf16.mxu0 %v3085_v37 }
 0x1a2   :  { %v3178_v29 = vpop.eup %3177 }
 0x1a3   :  { %v3180_v49 = vpop.eup %3179  ;;  %v1112_v50 = vadd.f32 1.0, %v3178_v29 }
 0x1a4   :  { %v3182_v52 = vpop.eup %3181  ;;  %2714 = vmatpush3.bf16.msra.mxu0 %v3086_v39  ;;  %v1113_v59 = vadd.f32 1.0, %v3180_v49  ;;  %v279_v49 = vrot.slane %v229_v18, %v246_v10 }
 0x1a5   :  { %v3184_v62 = vpop.eup %3183  ;;  %2715 = vmatprep.subr.bf16.mxu0 %v3087_v42  ;;  %v3686_v1 = vmul.f32 %v1112_v50, %v1040_v43  ;;  %v1124_v3 = vadd.f32 1.0, %v3182_v52  ;;  %v3098_v42 = vld [vmem:[#allocation11 + $0xa0] sm:$0xff]  }
 0x1a6   :  { %v1137_v4 = vmul.f32 %v1113_v59, %v1041_v45  ;;  %v1125_v5 = vadd.f32 1.0, %v3184_v62  ;;  %v3186_v20 = vpop.eup %3185  ;;  %v3100_v45 = vld [vmem:[#allocation11 + $0xa8] sm:$0xff]   ;;  %v3103_v59 = vld [vmem:[#allocation11 + $0xf8] sm:$0xff]  }
 0x1a7   :  { %v3688_v6 = vmul.f32 %v1124_v3, %v1052_v51  ;;  %v1114_v21 = vadd.f32 1.0, %v3186_v20  ;;  %v3188_v23 = vpop.eup %3187  ;;  %v3102_v51 = vld [vmem:[#allocation11 + $0xb0] sm:$0xff]  }
 0x1a8   :  { %2716 = vmatpush3.bf16.msra.mxu0 %v3088_v58  ;;  %v1149_v9 = vmul.f32 %v1125_v5, %v1053_v60 }
 0x1a9   :  { %2732 = vmatprep.subr.bf16.mxu0 %v3089_v63  ;;  %v1708_v13 = vpack.c.bf16 %v3688_v6, %v3686_v1  ;;  %v3699_v11 = vmul.f32 %v1114_v21, %v1042_v19  ;;  %v3105_v21 = vld [vmem:[#allocation11 + $0x1c0] sm:$0xff]   ;;  %v3112_v1 = vld [vmem:[#allocation11 + $0x198] sm:$0xff]  }
 0x1aa   :  { %v1709_v14 = vpack.c.bf16 %v1149_v9, %v1137_v4  ;;  %v3113_v6 = vld [vmem:[#allocation11 + $0x1e0] sm:$0xff]  }
 0x1ab   :  { %1599 = vmatmul.mubr.bf16.vlgmr.msra.gmra.mrb[16].mxu0 %v1436_v17  ;;  %v1126_v17 = vadd.f32 1.0, %v3188_v23 }
 0x1ac   :  { %2733 = vmatpush3.bf16.msra.mxu0 %v3090_v7  ;;  %1871 = vmatprep.mubr.bf16.mxu0 %v1709_v14 }
 0x1ad   :  { %2734 = vmatprep.subr.bf16.mxu0 %v3091_v12  ;;  %v3701_v28 = vmul.f32 %v1126_v17, %v1054_v22 }
 0x1af   :  { %v1892_v55 = vpack.c.bf16 %v3701_v28, %v3699_v11  ;;  %v3155_v11 = vld [vmem:[#allocation11 + $0x268] sm:$0xff]  }
 0x1b0   :  { %2735 = vmatpush3.bf16.msra.mxu0 %v3092_v15  ;;  %v3104_v15 = vld [vmem:[#allocation11 + $0xb8] sm:$0xff]   ;;  %v3156_v28 = vld [vmem:[#allocation11 + $0x228] sm:$0xff]  }
 0x1b1   :  { %2736 = vmatprep.subr.bf16.mxu0 %v3093_v16 }
 0x1b3   :  { %v984_v27 = vpop.f32.mrb[8].mxu0 }
 0x1b4   :  { %2737 = vmatpush3.bf16.msra.mxu0 %v3094_v24  ;;  %v985_v31 = vadd.f32 %v984_v27, %v267_v25  ;;  %v986_v32 = vpop.f32.mrb[9].mxu0  ;;  %v3107_v27 = vld [vmem:[#allocation11 + $0x1c8] sm:$0xff]  }
 0x1b5   :  { %2738 = vmatprep.subr.bf16.mxu0 %v3095_v26  ;;  %v987_v35 = vadd.f32 %v986_v32, %v271_v2  ;;  %v988_v36 = vpop.f32.mrb[10].mxu0  ;;  %v1027_v50 = vpop.f32.mrb[8].mxu1  ;;  %v3108_v32 = vld [vmem:[#allocation11 + $0x188] sm:$0xff]  }
 0x1b6   :  { %v1068_v37 = vmul.f32 0.70710677, %v985_v31  ;;  %v989_v38 = vadd.f32 %v988_v36, %v267_v25  ;;  %v990_v57 = vpop.f32.mrb[11].mxu0  ;;  %v1028_v52 = vadd.f32 %v1027_v50, %v275_v46  ;;  %v1029_v58 = vpop.f32.mrb[9].mxu1  ;;  %v1044_v60 = vmul.f32 0.5, %v985_v31  ;;  %v3119_v50 = vld [vmem:[#allocation11 + $0x1f8] sm:$0xff]  }
 0x1b7   :  { %v1069_v39 = vmul.f32 0.70710677, %v987_v35  ;;  %v991_v40 = vadd.f32 %v990_v57, %v271_v2  ;;  %v3709_v61 = vadd.f32 %v1029_v58, %v279_v49  ;;  %v1031_v62 = vpop.f32.mrb[10].mxu1  ;;  %v1045_v3 = vmul.f32 0.5, %v987_v35  ;;  %v3106_v2 = vld [vmem:[#allocation11 + $0x180] sm:$0xff]  }
 0x1b8   :  { %2739 = vmatpush3.bf16.msra.mxu0 %v3096_v30  ;;  %3189 = verf.f32 %v1068_v37  ;;  %v1080_v43 = vmul.f32 0.70710677, %v989_v38  ;;  %v1070_v4 = vmul.f32 0.70710677, %v1028_v52  ;;  %v1032_v8 = vadd.f32 %v1031_v62, %v275_v46  ;;  %v1033_v5 = vpop.f32.mrb[11].mxu1  ;;  %v3116_v46 = vld [vmem:[#allocation11 + $0x1a8] sm:$0xff]  }
 0x1b9   :  { %2740 = vmatprep.subr.bf16.mxu0 %v3097_v33  ;;  %3191 = verf.f32 %v1069_v39  ;;  %v1081_v29 = vmul.f32 0.70710677, %v991_v40  ;;  %v1056_v12 = vmul.f32 0.5, %v989_v38  ;;  %v3711_v10 = vadd.f32 %v1033_v5, %v279_v49  ;;  %v3109_v33 = vld [vmem:[#allocation11 + $0x1d0] sm:$0xff]   ;;  %v2577_v58 = vld [vmem:[%s3810_s4] ss:$0 sm:$0xff] }
 0x1ba   :  { %3193 = verf.f32 %v1080_v43  ;;  %v1057_v18 = vmul.f32 0.5, %v991_v40  ;;  %v1082_v19 = vmul.f32 0.70710677, %v1032_v8  ;;  %v1046_v35 = vmul.f32 0.5, %v1028_v52  ;;  %v3110_v39 = vld [vmem:[#allocation11 + $0x190] sm:$0xff]   ;;  %v3111_v40 = vld [vmem:[#allocation11 + $0x1d8] sm:$0xff]  }
 0x1bb   :  { %3195 = verf.f32 %v1081_v29  ;;  %v1058_v38 = vmul.f32 0.5, %v1032_v8  ;;  %v3114_v29 = vld [vmem:[#allocation11 + $0x1a0] sm:$0xff]   ;;  %v3118_v49 = vld [vmem:[#allocation11 + $0x1b0] sm:$0xff]   ;;  %v1270_v52 = vand.u32 127, %v232_v53  ;;  %s3453_s4 = smov [#allocation15]  }
 0x1bc   :  { %2741 = vmatpush3.bf16.msra.mxu0 %v3098_v42  ;;  %3197 = verf.f32 %v1070_v4 }
 0x1bd   :  { %2742 = vmatprep.subr.bf16.mxu0 %v3099_v44  ;;  %3199 = verf.f32 %v1082_v19  ;;  %vm1271_vm1 = vcmp.lt.s32.totalorder %v1270_v52, 5 }
 0x1c0   :  { %2743 = vmatpush3.bf16.msra.mxu0 %v3100_v45  ;;  %v3115_v45 = vld [vmem:[#allocation11 + $0x1e8] sm:$0xff]  }
 0x1c1   :  { %2744 = vmatprep.subr.bf16.mxu0 %v3101_v47  ;;  %v3117_v47 = vld [vmem:[#allocation11 + $0x1f0] sm:$0xff]  }
 0x1c2   :  { %v3190_v63 = vpop.eup %3189 }
 0x1c3   :  { %v3192_v7 = vpop.eup %3191  ;;  %v1116_v9 = vadd.f32 1.0, %v3190_v63 }
 0x1c4   :  { %v3194_v14 = vpop.eup %3193  ;;  %2745 = vmatpush3.bf16.msra.mxu0 %v3102_v51  ;;  %v1117_v16 = vadd.f32 1.0, %v3192_v7  ;;  %v3120_v51 = vld [vmem:[#allocation11 + $0x1b8] sm:$0xff]  }
 0x1c5   :  { %v3196_v20 = vpop.eup %3195  ;;  %2746 = vmatprep.subr.bf16.mxu0 %v3103_v59  ;;  %v1140_v22 = vmul.f32 %v1116_v9, %v1044_v60  ;;  %v1128_v23 = vadd.f32 1.0, %v3194_v14  ;;  %v2586_v59 = vld [vmem:[%s3812_s6] ss:$0 sm:$0xff]  ;;  %s2464_s6 = sshll.u32 %s3453_s4, 4  ;;  %s2465_s6 = int_to_ptr.vmem [resolvable:$true] %s2464_s6 }
 0x1c6   :  { %v1141_v24 = vmul.f32 %v1117_v16, %v1045_v3  ;;  %v1129_v25 = vadd.f32 1.0, %v3196_v20  ;;  %v3198_v36 = vpop.eup %3197  ;;  %s3379_s17 = scalar_lea.vmem %s2465_s6, 256  ;;  %p3384_p1 = scmp.lt.s32.totalorder %s2465_s6, %s2465_s6 }
 0x1c7   :  { %v1152_v26 = vmul.f32 %v1128_v23, %v1056_v12  ;;  %v1118_v37 = vadd.f32 1.0, %v3198_v36  ;;  %v3200_v57 = vpop.eup %3199  ;;  %v3121_v36 = vld [vmem:[#allocation13] sm:$0xff]   ;;  %p3380_p0 = scmp.ne.s32.totalorder %s2465_s6, %s3379_s17  ;;  %p3385_p2 = scmp.lt.s32.totalorder %s3379_s17, %s3379_s17 }
 0x1c8   :  { %2747 = vmatpush3.bf16.msra.mxu0 %v3104_v15  ;;  %v1153_v17 = vmul.f32 %v1129_v25, %v1057_v18  ;;  %v1130_v43 = vadd.f32 1.0, %v3200_v57  ;;  %2861 = vmatpush3.bf16.msra.mxu1 %v3121_v36  ;;  %v3124_v57 = vld [vmem:[#allocation13 + $0x18] sm:$0xff]  }
 0x1c9   :  { %2776 = vmatprep.subr.bf16.mxu0 %v3105_v21  ;;  %v2076_v30 = vpack.c.bf16 %v1152_v26, %v1140_v22  ;;  %v3716_v42 = vmul.f32 %v1118_v37, %v1046_v35  ;;  %v3122_v37 = vld [vmem:[#allocation13 + $0x8] sm:$0xff]   ;;  %2862 = vmatprep.subr.bf16.mxu1 %v3447_v34  ;;  %p3386_p3 = por %p3385_p2, %p3384_p1 }
 0x1ca   :  { %v2077_v31 = vpack.c.bf16 %v1153_v17, %v1141_v24  ;;  %v3718_v44 = vmul.f32 %v1130_v43, %v1058_v38  ;;  %v3123_v38 = vld [vmem:[#allocation13 + $0x10] sm:$0xff]  }
 0x1cb   :  { %1872 = vmatmul.mubr.bf16.vlgmr.msra.gmra.mrb[20].mxu0 %v1708_v13  ;;  %p3387_p4 = pnand %p3386_p3, %p3380_p0 }
 0x1cc   :  { %2777 = vmatpush3.bf16.msra.mxu0 %v3106_v2  ;;  %2239 = vmatprep.mubr.bf16.mxu0 %v2077_v31  ;;  %v2260_v13 = vpack.c.bf16 %v3718_v44, %v3716_v42 }
 0x1cd   :  { %2778 = vmatprep.subr.bf16.mxu0 %v3107_v27  ;;  %2863 = vmatpush3.bf16.msra.mxu1 %v3122_v37 }
 0x1ce   :  { %2864 = vmatprep.subr.bf16.mxu1 %v3447_v34 }
 0x1d0   :  { %2779 = vmatpush3.bf16.msra.mxu0 %v3108_v32 }
 0x1d1   :  { %2780 = vmatprep.subr.bf16.mxu0 %v3109_v33  ;;  %2865 = vmatpush3.bf16.msra.mxu1 %v3123_v38 }
 0x1d2   :  { %2866 = vmatprep.subr.bf16.mxu1 %v3447_v34 }
 0x1d4   :  { %2781 = vmatpush3.bf16.msra.mxu0 %v3110_v39 }
 0x1d5   :  { %2782 = vmatprep.subr.bf16.mxu0 %v3111_v40  ;;  %2867 = vmatpush3.bf16.msra.mxu1 %v3124_v57 }
 0x1d6   :  { %2868 = vmatprep.subr.bf16.mxu1 %v3447_v34 }
 0x1d8   :  { %2783 = vmatpush3.bf16.msra.mxu0 %v3112_v1 }
 0x1d9   :  { %2784 = vmatprep.subr.bf16.mxu0 %v3113_v6 }
 0x1dc   :  { %2785 = vmatpush3.bf16.msra.mxu0 %v3114_v29 }
 0x1dd   :  { %2786 = vmatprep.subr.bf16.mxu0 %v3115_v45 }
 0x1e0   :  { %2787 = vmatpush3.bf16.msra.mxu0 %v3116_v46 }
 0x1e1   :  { %2788 = vmatprep.subr.bf16.mxu0 %v3117_v47 }
 0x1e4   :  { %2789 = vmatpush3.bf16.msra.mxu0 %v3118_v49 }
 0x1e5   :  { %2790 = vmatprep.subr.bf16.mxu0 %v3119_v50 }
 0x1e8   :  { %2791 = vmatpush3.bf16.msra.mxu0 %v3120_v51 }
 0x1eb   :  { %2240 = vmatmul.mubr.bf16.vlgmr.msra.gmra.mrb[24].mxu0 %v2076_v30 }
 0x25e   :  { %v1262_v60 = vpop.f32.mrb[12].mxu0 }
 0x25f   :  { %v1263_v62 = vadd.f32 %v2577_v58, %v1262_v60  ;;  %v2838_v63 = vpop.f32.mrb[13].mxu0  ;;  %v1398_v3 = vpop.f32.mrb[12].mxu1 }
 0x260   :  { %v1399_v4 = vadd.f32 %v2586_v59, %v1398_v3  ;;  %v1265_v8 = vpop.f32.mrb[14].mxu0  ;;  %v2858_v5 = vpop.f32.mrb[13].mxu1 }
 0x261   :  { %v1266_v7 = vadd.f32 %v2577_v58, %v1265_v8  ;;  %v2839_v9 = vpop.f32.mrb[15].mxu0  ;;  %v1401_v12 = vpop.f32.mrb[14].mxu1  ;;  %v1272_v53 = vsel %vm1271_vm1, %v1263_v62, -1e+30  ;;  %v262_v8 = vsub.s32 7, %v3648_v54  ;;  %v3449_v54 = vmov 1  }
 0x262   :  { %v1405_v14 = vsub.f32 0.0, %v1399_v4  ;;  %v1402_v15 = vadd.f32 %v2586_v59, %v1401_v12  ;;  %v2859_v16 = vpop.f32.mrb[15].mxu1  ;;  %1274 = vmax.xlane.f32.xlu0 %v1272_v53  ;;  %2903 = vset.pattern.permute.xlu1 %v3449_v54 }
 0x263   :  { %v1273_v20 = vsel %vm1271_vm1, %v1266_v7, -1e+30  ;;  %v263_v5 = vrot.slane %v3651_v56, %v262_v8  ;;  %v3125_v7 = vld [vmem:[#allocation13 + $0x20] sm:$0xff]   ;;  %v3127_v16 = vld [vmem:[#allocation13 + $0x30] sm:$0xff]   ;;  %v3128_v56 = vld [vmem:[#allocation13 + $0x38] sm:$0xff]  }
 0x264   :  { %v1407_v18 = vmul.f32 1.442695, %v1405_v14  ;;  %v1406_v19 = vsub.f32 0.0, %v1402_v15  ;;  %2869 = vmatpush3.bf16.msra.mxu1 %v3125_v7  ;;  %v3138_v8 = vld [vmem:[#allocation11 + $0x120] sm:$0xff]   ;;  %v3140_v7 = vld [vmem:[#allocation11 + $0x128] sm:$0xff]  }
 0x265   :  { %v944_v9 = vadd.f32 %v3682_v41, %v263_v5  ;;  %v948_v12 = vadd.f32 %v3684_v48, %v263_v5  ;;  %2870 = vmatprep.subr.bf16.mxu1 %v3447_v34  ;;  %v3129_v41 = vld [vmem:[#allocation11 + $0x140] sm:$0xff]   ;;  %v3139_v5 = vld [vmem:[#allocation11 + $0x168] sm:$0xff]  }
 0x266   :  { %3201 = vpow2.f32 %v1407_v18  ;;  %v1409_v21 = vmul.f32 1.442695, %v1406_v19  ;;  %1276 = vmax.xlane.f32.xlu0 %v1273_v20 }
 0x267   :  { %v1067_v14 = vmul.f32 0.70710677, %v944_v9  ;;  %v1079_v15 = vmul.f32 0.70710677, %v948_v12  ;;  %v1043_v19 = vmul.f32 0.5, %v944_v9  ;;  %v3141_v9 = vld [vmem:[#allocation11 + $0x170] sm:$0xff]  }
 0x268   :  { %3203 = vpow2.f32 %v1409_v21  ;;  %v1055_v21 = vmul.f32 0.5, %v948_v12  ;;  %v3143_v12 = vld [vmem:[#allocation11 + $0x178] sm:$0xff]  }
 0x270   :  { %v3202_v22 = vpop.eup %3201 }
 0x271   :  { %v1411_v23 = vadd.f32 1.0, %v3202_v22 }
 0x272   :  { %v3204_v24 = vpop.eup %3203 }
 0x273   :  { %v1412_v25 = vadd.f32 1.0, %v3204_v24  ;;  %3205 = vrcp.f32 %v1411_v23 }
 0x275   :  { %3207 = vrcp.f32 %v1412_v25 }
 0x27d   :  { %v3206_v26 = vpop.eup %3205 }
 0x27e   :  { %v2717_v2 = vpop.f32.mrb[16].mxu0 }
 0x27f   :  { %v3208_v17 = vpop.eup %3207  ;;  %v2718_v27 = vpop.f32.mrb[17].mxu0 }
 0x280   :  { %v3731_v30 = vadd.f32 %v2718_v27, %v2717_v2  ;;  %v2720_v31 = vpop.f32.mrb[18].mxu0  ;;  %v1417_v32 = vadd.f32 %v3208_v17, %v3206_v26  ;;  %v1071_v26 = vmul.f32 0.70710677, %v3709_v61  ;;  %v1083_v2 = vmul.f32 0.70710677, %v3711_v10 }
 0x281   :  { %v2721_v33 = vpop.f32.mrb[19].mxu0  ;;  %v1047_v27 = vmul.f32 0.5, %v3709_v61 }
 0x282   :  { %v3733_v35 = vadd.f32 %v2721_v33, %v2720_v31  ;;  %1418 = vst [vmem:[#allocation15 + $0x8] sm:$0xff] %v1417_v32  ;;  %v1059_v32 = vmul.f32 0.5, %v3711_v10  ;;  %v3450_v10 = vmov 4  }
 0x29e   :  { %v2748_v39 = vpop.f32.mrb[20].mxu0 }
 0x29f   :  { %v2749_v40 = vpop.f32.mrb[21].mxu0 }
 0x2a0   :  { %v3739_v43 = vadd.f32 %v2749_v40, %v2748_v39  ;;  %v2751_v1 = vpop.f32.mrb[22].mxu0 }
 0x2a1   :  { %v2752_v6 = vpop.f32.mrb[23].mxu0 }
 0x2a2   :  { %v3741_v29 = vadd.f32 %v2752_v6, %v2751_v1 }
 0x2be   :  { %v2792_v45 = vpop.f32.mrb[24].mxu0 }
 0x2bf   :  { %v2793_v46 = vpop.f32.mrb[25].mxu0 }
 0x2c0   :  { %v3743_v47 = vadd.f32 %v2793_v46, %v2792_v45  ;;  %v2795_v49 = vpop.f32.mrb[26].mxu0  ;;  %v3130_v45 = vld [vmem:[#allocation11 + $0x100] sm:$0xff]   ;;  %v3451_v46 = vmov 2  }
 0x2c1   :  { %v2796_v50 = vpop.f32.mrb[27].mxu0 }
 0x2c2   :  { %v3745_v51 = vadd.f32 %v2796_v50, %v2795_v49  ;;  %v3131_v50 = vld [vmem:[#allocation11 + $0x148] sm:$0xff]  }
 0x2ef   :  { %v1275_v52 = vpop.xlane.xlu0 %1274 }
 0x2f0   :  { %v1278_v58 = vsub.f32 %v1272_v53, %v1275_v52  ;;  %v3126_v53 = vld [vmem:[#allocation13 + $0x28] sm:$0xff]  }
 0x2f1   :  { %2871 = vmatpush3.bf16.msra.mxu1 %v3126_v53  ;;  %v3144_v53 = vld [vmem:[#allocation11 + $0x138] sm:$0xff]  }
 0x2f2   :  { %v1280_v59 = vmul.f32 1.442695, %v1278_v58  ;;  %2872 = vmatprep.subr.bf16.mxu1 %v3447_v34  ;;  %v3132_v58 = vld [vmem:[#allocation11 + $0x108] sm:$0xff]  }
 0x2f3   :  { %v1277_v60 = vpop.xlane.xlu0 %1276 }
 0x2f4   :  { %3209 = vpow2.f32 %v1280_v59  ;;  %v1279_v62 = vsub.f32 %v1273_v20, %v1277_v60  ;;  %v3133_v59 = vld [vmem:[#allocation11 + $0x150] sm:$0xff]   ;;  %v3452_v60 = vmov 3  }
 0x2f5   :  { %2873 = vmatpush3.bf16.msra.mxu1 %v3127_v16  ;;  %v3147_v16 = vld [vmem:[#allocation11 + $0x248] sm:$0xff]  }
 0x2f6   :  { %v1282_v63 = vmul.f32 1.442695, %v1279_v62  ;;  %2874 = vmatprep.subr.bf16.mxu1 %v3447_v34  ;;  %v3134_v62 = vld [vmem:[#allocation11 + $0x110] sm:$0xff]  }
 0x2f8   :  { %3211 = vpow2.f32 %v1282_v63  ;;  %v3135_v63 = vld [vmem:[#allocation11 + $0x158] sm:$0xff]  }
 0x2f9   :  { %3213 = verf.f32 %v1067_v14  ;;  %2875 = vmatpush3.bf16.msra.mxu1 %v3128_v56  ;;  %v3145_v14 = vld [vmem:[#allocation11 + $0x240] sm:$0xff]   ;;  %v3149_v56 = vld [vmem:[#allocation11 + $0x250] sm:$0xff]  }
 0x2fa   :  { %3215 = verf.f32 %v1079_v15  ;;  %2754 = vmatprep.subr.bf16.mxu1 %v3129_v41  ;;  %v3146_v15 = vld [vmem:[#allocation11 + $0x200] sm:$0xff]   ;;  %v3150_v41 = vld [vmem:[#allocation11 + $0x210] sm:$0xff]  }
 0x2fb   :  { %3217 = verf.f32 %v1071_v26 }
 0x2fc   :  { %3219 = verf.f32 %v1083_v2 }
 0x2fe   :  { %v3210_v3 = vpop.eup %3209 }
 0x2ff   :  { %1284 = vadd.xlane.f32.xlu1 %v3210_v3 }
 0x302   :  { %v3212_v4 = vpop.eup %3211 }
 0x303   :  { %1286 = vadd.xlane.f32.xlu1 %v3212_v4  ;;  %v3214_v48 = vpop.eup %3213 }
 0x304   :  { %v3216_v18 = vpop.eup %3215  ;;  %v1115_v20 = vadd.f32 1.0, %v3214_v48  ;;  %v3151_v48 = vld [vmem:[#allocation11 + $0x258] sm:$0xff]  }
 0x305   :  { %v1127_v22 = vadd.f32 1.0, %v3216_v18  ;;  %v3218_v34 = vpop.eup %3217  ;;  %v3152_v18 = vld [vmem:[#allocation11 + $0x218] sm:$0xff]  }
 0x306   :  { %v1139_v23 = vmul.f32 %v1115_v20, %v1043_v19  ;;  %v3220_v17 = vpop.eup %3219  ;;  %v1119_v31 = vadd.f32 1.0, %v3218_v34  ;;  %v3153_v19 = vld [vmem:[#allocation11 + $0x260] sm:$0xff]  }
 0x307   :  { %v1151_v24 = vmul.f32 %v1127_v22, %v1055_v21  ;;  %v1131_v33 = vadd.f32 1.0, %v3220_v17  ;;  %v3154_v20 = vld [vmem:[#allocation11 + $0x220] sm:$0xff]   ;;  %v3158_v21 = vld [vmem:[#allocation11 + $0x230] sm:$0xff]   ;;  %v3159_v22 = vld [vmem:[#allocation11 + $0x278] sm:$0xff]  }
 0x308   :  { %v3759_v36 = vmul.f32 %v1119_v31, %v1047_v27 }
 0x309   :  { %v1893_v25 = vpack.c.bf16 %v1151_v24, %v1139_v23  ;;  %v3761_v37 = vmul.f32 %v1131_v33, %v1059_v32  ;;  %v3160_v23 = vld [vmem:[#allocation11 + $0x238] sm:$0xff]  }
 0x30b   :  { %v2261_v38 = vpack.c.bf16 %v3761_v37, %v3759_v36 }
 0x38c   :  { %v1285_v57 = vpop.xlane.xlu1 %1284 }
 0x38d   :  { %3221 = vrcp.f32 %v1285_v57 }
 0x390   :  { %v1287_v39 = vpop.xlane.xlu1 %1286 }
 0x391   :  { %3223 = vrcp.f32 %v1287_v39 }
 0x397   :  { %v3222_v40 = vpop.eup %3221 }
 0x398   :  { %v1290_v1 = vmul.f32 %v3222_v40, %v3210_v3  ;;  %v3136_v3 = vld [vmem:[#allocation11 + $0x118] sm:$0xff]  }
 0x39a   :  { %1609 = vperm.xlu0 %2902, %v1290_v1   ;;  %1881 = vperm.xlu1 %2903, %v1290_v1  }
 0x39b   :  { %v3224_v61 = vpop.eup %3223 }
 0x39c   :  { %v1291_v6 = vmul.f32 %v3224_v61, %v3212_v4  ;;  %v3137_v4 = vld [vmem:[#allocation11 + $0x160] sm:$0xff]  }
 0x39e   :  { %2911 = vset.pattern.permute.xlu0 %v3450_v10  ;;  %2904 = vset.pattern.permute.xlu1 %v3451_v46  ;;  %v1419_v49 = vpack.c.bf16 %v1291_v6, %v1290_v1  ;;  %v1415_v52 = vadd.f32 %v1291_v6, %v1290_v1 }
 0x39f   :  { %2065 = vperm.xlu1 %2904, %v1290_v1   ;;  %2437 = vperm.xlu0 %2911, %v1291_v6  }
 0x3a0   :  { %2877 = vmatmul.mubr.bf16.vlgmr.msra.gmra.mrb[16].mxu1 %v1419_v49  ;;  %1416 = vst [vmem:[#allocation15] sm:$0xff] %v1415_v52 }
 0x3a1   :  { %2755 = vmatpush3.bf16.msra.mxu1 %v3130_v45  ;;  %2055 = vmatprep.mubr.bf16.mxu1 %v1893_v25 }
 0x3a2   :  { %2756 = vmatprep.subr.bf16.mxu1 %v3131_v50 }
 0x3a3   :  { %2905 = vset.pattern.permute.xlu1 %v3452_v60 }
 0x3a4   :  { %2249 = vperm.xlu1 %2905, %v1290_v1  }
 0x3a5   :  { %2757 = vmatpush3.bf16.msra.mxu1 %v3132_v58 }
 0x3a6   :  { %2758 = vmatprep.subr.bf16.mxu1 %v3133_v59 }
 0x3a8   :  { %2906 = vset.pattern.permute.xlu1 %v3446_v0  ;;  %v3142_v0 = vld [vmem:[#allocation11 + $0x130] sm:$0xff]  }
 0x3a9   :  { %2759 = vmatpush3.bf16.msra.mxu1 %v3134_v62  ;;  %1614 = vperm.xlu1 %2906, %v1291_v6  }
 0x3aa   :  { %2760 = vmatprep.subr.bf16.mxu1 %v3135_v63 }
 0x3ad   :  { %2761 = vmatpush3.bf16.msra.mxu1 %v3136_v3  ;;  %2907 = vset.pattern.permute.xlu1 %v3449_v54  ;;  %v3148_v54 = vld [vmem:[#allocation11 + $0x208] sm:$0xff]  }
 0x3ae   :  { %1885 = vperm.xlu1 %2907, %v1291_v6   ;;  %2762 = vmatprep.subr.bf16.mxu1 %v3137_v4 }
 0x3b1   :  { %2763 = vmatpush3.bf16.msra.mxu1 %v3138_v8 }
 0x3b2   :  { %2908 = vset.pattern.permute.xlu1 %v3451_v46  ;;  %2764 = vmatprep.subr.bf16.mxu1 %v3139_v5 }
 0x3b3   :  { %2069 = vperm.xlu1 %2908, %v1291_v6  }
 0x3b5   :  { %2765 = vmatpush3.bf16.msra.mxu1 %v3140_v7 }
 0x3b6   :  { %2766 = vmatprep.subr.bf16.mxu1 %v3141_v9 }
 0x3b7   :  { %2909 = vset.pattern.permute.xlu1 %v3452_v60 }
 0x3b8   :  { %2253 = vperm.xlu1 %2909, %v1291_v6  }
 0x3b9   :  { %2767 = vmatpush3.bf16.msra.mxu1 %v3142_v0 }
 0x3ba   :  { %2768 = vmatprep.subr.bf16.mxu1 %v3143_v12 }
 0x3bc   :  { %2910 = vset.pattern.permute.xlu1 %v3450_v10 }
 0x3bd   :  { %2769 = vmatpush3.bf16.msra.mxu1 %v3144_v53  ;;  %2433 = vperm.xlu1 %2910, %v1290_v1  }
 0x3be   :  { %2798 = vmatprep.subr.bf16.mxu1 %v3145_v14 }
 0x3c0   :  { %2056 = vmatmul.mubr.bf16.vlgmr.msra.gmra.mrb[20].mxu1 %v1892_v55  ;;  %v3157_v55 = vld [vmem:[#allocation11 + $0x270] sm:$0xff]  }
 0x3c1   :  { %2799 = vmatpush3.bf16.msra.mxu1 %v3146_v15  ;;  %2423 = vmatprep.mubr.bf16.mxu1 %v2261_v38 }
 0x3c2   :  { %2800 = vmatprep.subr.bf16.mxu1 %v3147_v16 }
 0x3c5   :  { %2801 = vmatpush3.bf16.msra.mxu1 %v3148_v54 }
 0x3c6   :  { %2802 = vmatprep.subr.bf16.mxu1 %v3149_v56 }
 0x3c9   :  { %2803 = vmatpush3.bf16.msra.mxu1 %v3150_v41 }
 0x3ca   :  { %2804 = vmatprep.subr.bf16.mxu1 %v3151_v48 }
 0x3cd   :  { %2805 = vmatpush3.bf16.msra.mxu1 %v3152_v18 }
 0x3ce   :  { %2806 = vmatprep.subr.bf16.mxu1 %v3153_v19 }
 0x3d1   :  { %2807 = vmatpush3.bf16.msra.mxu1 %v3154_v20 }
 0x3d2   :  { %2808 = vmatprep.subr.bf16.mxu1 %v3155_v11 }
 0x3d5   :  { %2809 = vmatpush3.bf16.msra.mxu1 %v3156_v28 }
 0x3d6   :  { %2810 = vmatprep.subr.bf16.mxu1 %v3157_v55 }
 0x3d9   :  { %2811 = vmatpush3.bf16.msra.mxu1 %v3158_v21 }
 0x3da   :  { %2812 = vmatprep.subr.bf16.mxu1 %v3159_v22 }
 0x3dd   :  { %2813 = vmatpush3.bf16.msra.mxu1 %v3160_v23 }
 0x3e0   :  { %2424 = vmatmul.mubr.bf16.vlgmr.msra.gmra.mrb[24].mxu1 %v2260_v13 }
 0x3e1   :  { %3390 = shalt.err (!%p3387_p4)
}
 0x3e2   :  { %s3391_s20 = scalar_lea.hbm %s3816_s10, 256 }
 0x3e3   :  { %p3392_p5 = scmp.ne.s32.totalorder %s3816_s10, %s3391_s20  ;;  %p3395_p6 = scmp.lt.u32.totalorder %s3391_s20, %s3816_s10 }
 0x3e5   :  { %p3397_p7 = pnand %p3395_p6, %p3392_p5 }
 0x3e7   :  { %3400 = shalt.err (!%p3397_p7)
}
 0x3e8   :  { %2467 = dma.vmem_to_hbm [thread:$0]  %s2465_s6, 256, %s3816_s10, [#allocation16]  }
 0x3e9   :  { %s3454_s10 = smov [#allocation14]  }
 0x3ea   :  { %s2451_s2 = sshll.u32 %s3454_s10, 4  ;;  %s2452_s2 = int_to_ptr.vmem [resolvable:$true] %s2451_s2 }
 0x3eb   :  { %s3401_s16 = scalar_lea.vmem %s2452_s2, 256  ;;  %p3406_p9 = scmp.lt.s32.totalorder %s2452_s2, %s2452_s2 }
 0x3ec   :  { %p3402_p8 = scmp.ne.s32.totalorder %s2452_s2, %s3401_s16  ;;  %p3407_p10 = scmp.lt.s32.totalorder %s3401_s16, %s3401_s16 }
 0x3ee   :  { %p3408_p11 = por %p3407_p10, %p3406_p9 }
 0x3f0   :  { %p3409_p12 = pnand %p3408_p11, %p3402_p8 }
 0x419   :  { %v1882_v42 = vpop.permute.xlu1 %1881  ;;  %v1610_v25 = vpop.permute.xlu0 %1609 }
 0x41a   :  { %v1617_v26 = vmul.f32 %v3731_v30, %v1610_v25  ;;  %v1888_v17 = vmul.f32 %v3739_v43, %v1882_v42 }
 0x41e   :  { %v2066_v44 = vpop.permute.xlu1 %2065  ;;  %v2438_v9 = vpop.permute.xlu0 %2437 }
 0x423   :  { %v2250_v13 = vpop.permute.xlu1 %2249 }
 0x428   :  { %v1615_v24 = vpop.permute.xlu1 %1614 }
 0x429   :  { %v1618_v27 = vmul.f32 %v3733_v35, %v1615_v24  ;;  %v2256_v35 = vmul.f32 %v3743_v47, %v2250_v13 }
 0x42d   :  { %v1886_v2 = vpop.permute.xlu1 %1885 }
 0x42e   :  { %v1889_v36 = vmul.f32 %v3741_v29, %v1886_v2 }
 0x432   :  { %v2070_v40 = vpop.permute.xlu1 %2069 }
 0x437   :  { %v2254_v43 = vpop.permute.xlu1 %2253 }
 0x438   :  { %v2257_v52 = vmul.f32 %v3745_v51, %v2254_v43 }
 0x43c   :  { %v2434_v4 = vpop.permute.xlu1 %2433 }
 0x473   :  { %v1701_v34 = vpop.f32.mrb[16].mxu1 }
 0x474   :  { %v1702_v31 = vadd.f32 %v1701_v34, %v1617_v26  ;;  %v2878_v32 = vpop.f32.mrb[17].mxu1 }
 0x475   :  { %v1704_v33 = vpop.f32.mrb[18].mxu1 }
 0x476   :  { %v1890_v37 = vadd.f32 %v1888_v17, %v1702_v31  ;;  %v1705_v38 = vadd.f32 %v1704_v33, %v1618_v27  ;;  %v2879_v57 = vpop.f32.mrb[19].mxu1 }
 0x478   :  { %v1891_v39 = vadd.f32 %v1889_v36, %v1705_v38 }
 0x493   :  { %v2770_v1 = vpop.f32.mrb[20].mxu1 }
 0x494   :  { %v2771_v61 = vpop.f32.mrb[21].mxu1 }
 0x495   :  { %v2772_v6 = vadd.f32 %v2771_v61, %v2770_v1  ;;  %v2773_v30 = vpop.f32.mrb[22].mxu1 }
 0x496   :  { %v2774_v45 = vpop.f32.mrb[23].mxu1 }
 0x497   :  { %v2072_v10 = vmul.f32 %v2772_v6, %v2066_v44  ;;  %v2775_v46 = vadd.f32 %v2774_v45, %v2773_v30 }
 0x499   :  { %v2074_v49 = vadd.f32 %v2072_v10, %v1890_v37  ;;  %v2073_v50 = vmul.f32 %v2775_v46, %v2070_v40 }
 0x49b   :  { %v2075_v29 = vadd.f32 %v2073_v50, %v1891_v39  ;;  %v2258_v58 = vadd.f32 %v2256_v35, %v2074_v49 }
 0x49d   :  { %v2259_v59 = vadd.f32 %v2257_v52, %v2075_v29 }
 0x4b3   :  { %v2814_v60 = vpop.f32.mrb[24].mxu1 }
 0x4b4   :  { %v2815_v62 = vpop.f32.mrb[25].mxu1 }
 0x4b5   :  { %v2816_v63 = vadd.f32 %v2815_v62, %v2814_v60  ;;  %v2817_v3 = vpop.f32.mrb[26].mxu1 }
 0x4b6   :  { %v2818_v8 = vpop.f32.mrb[27].mxu1 }
 0x4b7   :  { %v2440_v5 = vmul.f32 %v2816_v63, %v2434_v4  ;;  %v2819_v7 = vadd.f32 %v2818_v8, %v2817_v3 }
 0x4b9   :  { %v2442_v0 = vadd.f32 %v2440_v5, %v2258_v58  ;;  %v2441_v47 = vmul.f32 %v2819_v7, %v2438_v9 }
 0x4bb   :  { %2444 = vst [vmem:[#allocation14] sm:$0xff] %v2442_v0  ;;  %v2443_v12 = vadd.f32 %v2441_v47, %v2259_v59 }
 0x4bd   :  { %2445 = vst [vmem:[#allocation14 + $0x8] sm:$0xff] %v2443_v12 }
 0x4be   :  { %3412 = shalt.err (!%p3409_p12)
}
 0x4bf   :  { %s3413_s27 = scalar_lea.hbm %s3815_s9, 256 }
 0x4c0   :  { %p3414_p13 = scmp.ne.s32.totalorder %s3815_s9, %s3413_s27  ;;  %p3417_p0 = scmp.lt.u32.totalorder %s3413_s27, %s3815_s9 }
 0x4c2   :  { %p3419_p1 = pnand %p3417_p0, %p3414_p13 }
 0x4c4   :  { %3422 = shalt.err (!%p3419_p1)
}
 0x4c5   :  { %s3455_s12 = smov 128   ;;  %s3456_s0 = smov 8  }
 0x4c6   :  { %2457 = dma.vmem_to_hbm [thread:$0]  %s2452_s2, 256, %s3815_s9, [#allocation4], %s3455_s12, %s3455_s12, %s3456_s0  }
 0x4c7   :  { %3431 = dma.done.wait [#allocation4], 256  }
 0x4c8   :  { %3432 = vsyncadd [#allocation4], 4294967040 }
 0x4c9   :  { %3433 = dma.done.wait [#allocation16], 256  }
 0x4ca   :  { %3434 = vsyncadd [#allocation16], 4294967040 }
 0x4cb   :  { %2474 = vsyncpa [#allocation3], 1 }
 0x4cc   :  { %2475 = vsyncpa [#allocation6], 1 }
 0x4cd   :  { %2476 = vsyncpa [#allocation9], 1 }
 0x4ce   :  { %2477 = vsyncpa [#allocation12], 1 }
 0x4cf   :  { %2478 = vsyncpa [#allocation4], 1 }
 0x4d0   :  { %2479 = vsyncpa [#allocation16], 1 }

</bundles_post_ra>
